<compile_context>
chip_gen: v7x
topology: tpu7x:2x2x1
jax: 0.10.0
libtpu: 0.0.40
codegen_flags: <defaults>
</compile_context>

<pallas_src>
import functools

import jax
import jax.numpy as jnp
from jax.experimental import pallas as pl
from jax.experimental.pallas import tpu as pltpu


def _round_up(x, m):
    return ((x + m - 1) // m) * m


# ----------------------------------------------------------------------------- kernel
def _rollout_kernel(x_ref, h0_ref, c0_ref,
                    wih_ref, whh_ref, bg_ref, whd_ref, bhd_ref,
                    mask_ref, gum_ref,
                    probs_ref, misc_ref, act_ref, h_ref, c_ref,
                    *, action_size):
    f32 = jnp.float32
    t = pl.program_id(0)

    # Initialize the resident recurrent state from the provided initial state.
    @pl.when(t == 0)
    def _():
        h_ref[...] = h0_ref[...]
        c_ref[...] = c0_ref[...]

    GW = h_ref.shape[1]          # padded 2*hidden (actor|critic|pad), multiple of 128
    cdt = wih_ref.dtype          # MXU compute dtype (bf16)

    h = h_ref[...]
    c = c_ref[...]

    # Fused input + hidden projections for BOTH LSTM cells (gate blocks of width GW).
    gates = (jnp.dot(x_ref[...], wih_ref[...], preferred_element_type=f32)
             + jnp.dot(h.astype(cdt), whh_ref[...], preferred_element_type=f32)
             + bg_ref[...])
    i_g = jax.nn.sigmoid(gates[:, 0 * GW:1 * GW])
    f_g = jax.nn.sigmoid(gates[:, 1 * GW:2 * GW])
    g_g = jnp.tanh(gates[:, 2 * GW:3 * GW])
    o_g = jax.nn.sigmoid(gates[:, 3 * GW:4 * GW])
    c_new = f_g * c + i_g * g_g
    h_new = o_g * jnp.tanh(c_new)          # lanes [0,H)=actor h, [H,2H)=critic h
    h_ref[...] = h_new
    c_ref[...] = c_new

    # Fused policy + value head: cols [0,A) = actor logits, col A = critic value.
    head = (jnp.dot(h_new.astype(cdt), whd_ref[...], preferred_element_type=f32)
            + bhd_ref[...])

    mask = mask_ref[...] != 0                      # padding/value cols are masked out
    mask_value = jnp.finfo(f32).min                # torch.finfo(logits.dtype).min
    logits_m = jnp.where(mask, head, mask_value)

    # torch Categorical normalizes logits internally: logits - logsumexp(logits).
    m = jnp.max(logits_m, axis=-1, keepdims=True)
    lse = m + jnp.log(jnp.sum(jnp.exp(logits_m - m), axis=-1, keepdims=True))
    logits_n = logits_m - lse
    probs = jnp.exp(logits_n)

    # Gumbel-max sampling (noise supplied from the host PRNG).  Use a safe large
    # negative (not finfo.min) for masked lanes so adding noise cannot hit -inf.
    scores = jnp.where(mask, head, -1e30) + gum_ref[...]
    smax = jnp.max(scores, axis=-1, keepdims=True)
    AP = head.shape[1]
    iota = jax.lax.broadcasted_iota(jnp.int32, head.shape, 1)
    action = jnp.min(jnp.where(scores == smax, iota, AP), axis=-1, keepdims=True)

    # log_prob(action) = normalized logit at the sampled index.
    log_prob = jnp.sum(jnp.where(iota == action, logits_n, 0.0),
                       axis=-1, keepdims=True)
    # masked entropy: -sum(where(mask, logits*probs, 0))
    p_log_p = jnp.where(mask, logits_n * probs, 0.0)
    entropy = -jnp.sum(p_log_p, axis=-1, keepdims=True)

    value = head[:, action_size:action_size + 1]   # critic value column

    # Lane-dense 128-wide output slabs (unmasked stores).
    probs_ref[...] = probs
    act_ref[...] = jnp.broadcast_to(action, act_ref.shape)
    misc_ref[...] = jnp.where(iota == 0, log_prob,
                              jnp.where(iota == 1, entropy,
                                        jnp.where(iota == 2, value, 0.0)))


# ------------------------------------------------------------------------- parameters
def init_params(key, feature_size, action_size, hidden_size):
    """PyTorch-layout parameters, uniform(-1/sqrt(H), 1/sqrt(H)) like nn.LSTMCell/Linear."""
    ks = jax.random.split(key, 12)
    H = hidden_size

    def u(k, shape, fan):
        bound = 1.0 / jnp.sqrt(jnp.float32(fan))
        return jax.random.uniform(k, shape, jnp.float32, -bound, bound)

    return dict(
        wih_a=u(ks[0], (4 * H, feature_size), H), whh_a=u(ks[1], (4 * H, H), H),
        bih_a=u(ks[2], (4 * H,), H), bhh_a=u(ks[3], (4 * H,), H),
        wih_c=u(ks[4], (4 * H, feature_size), H), whh_c=u(ks[5], (4 * H, H), H),
        bih_c=u(ks[6], (4 * H,), H), bhh_c=u(ks[7], (4 * H,), H),
        wpi=u(ks[8], (action_size, H), H), bpi=u(ks[9], (action_size,), H),
        wv=u(ks[10], (1, H), H), bv=u(ks[11], (1,), H),
    )


def prepare_params(params, hidden_size, action_size, feature_size,
                   compute_dtype=jnp.bfloat16):
    """One-time weight fusion: done OUTSIDE the per-step/rollout path.

    Gate column layout per gate block (width GW = round_up(2H, 128)):
      [0,H) actor, [H,2H) critic, [2H,GW) zero padding (stays exactly zero through
      the recurrence).  Head: cols [0,A) actor logits, col A critic value.
    """
    H, A, F = hidden_size, action_size, feature_size
    GW = _round_up(2 * H, 128)
    AP = _round_up(A + 1, 128)

    w_ih = jnp.zeros((F, 4 * GW), jnp.float32)
    w_hh = jnp.zeros((GW, 4 * GW), jnp.float32)
    b_g = jnp.zeros((1, 4 * GW), jnp.float32)
    for k in range(4):   # PyTorch LSTMCell gate order: i, f, g, o
        w_ih = w_ih.at[:, k * GW:k * GW + H].set(params["wih_a"][k * H:(k + 1) * H, :].T)
        w_ih = w_ih.at[:, k * GW + H:k * GW + 2 * H].set(params["wih_c"][k * H:(k + 1) * H, :].T)
        w_hh = w_hh.at[0:H, k * GW:k * GW + H].set(params["whh_a"][k * H:(k + 1) * H, :].T)
        w_hh = w_hh.at[H:2 * H, k * GW + H:k * GW + 2 * H].set(params["whh_c"][k * H:(k + 1) * H, :].T)
        b_g = b_g.at[0, k * GW:k * GW + H].set(
            params["bih_a"][k * H:(k + 1) * H] + params["bhh_a"][k * H:(k + 1) * H])
        b_g = b_g.at[0, k * GW + H:k * GW + 2 * H].set(
            params["bih_c"][k * H:(k + 1) * H] + params["bhh_c"][k * H:(k + 1) * H])

    w_head = jnp.zeros((GW, AP), jnp.float32)
    w_head = w_head.at[0:H, 0:A].set(params["wpi"].T)
    w_head = w_head.at[H:2 * H, A].set(params["wv"][0, :])
    b_head = jnp.zeros((1, AP), jnp.float32)
    b_head = b_head.at[0, 0:A].set(params["bpi"])
    b_head = b_head.at[0, A].set(params["bv"][0])

    return dict(
        w_ih=w_ih.astype(compute_dtype),
        w_hh=w_hh.astype(compute_dtype),
        b_gates=b_g,
        w_head=w_head.astype(compute_dtype),
        b_head=b_head,
    )


# --------------------------------------------------------------------------- wrappers
def lstm_actor_critic_rollout(prep, obs_seq, *, hidden_size, action_size,
                              states=None, mask_seq=None, sample_key=None):
    """Run T recurrent forward steps in ONE pallas_call (grid over time)."""
    T, B = obs_seq.shape[0], obs_seq.shape[1]
    H, A = hidden_size, action_size
    F = prep["w_ih"].shape[0]
    GW = prep["w_hh"].shape[0]
    AP = prep["w_head"].shape[1]
    cdt = prep["w_ih"].dtype
    Bp = _round_up(B, 8)                            # pad batch to full sublanes

    x = obs_seq.reshape(T, B, -1).astype(jnp.float32)        # FlattenExtractor
    x = jnp.pad(x, ((0, 0), (0, Bp - B), (0, 0))).astype(cdt)

    h0 = jnp.zeros((Bp, GW), jnp.float32)
    c0 = jnp.zeros((Bp, GW), jnp.float32)
    if states is not None:
        (ha, ca), (hc, cc) = states
        h0 = h0.at[:B, 0:H].set(ha).at[:B, H:2 * H].set(hc)
        c0 = c0.at[:B, 0:H].set(ca).at[:B, H:2 * H].set(cc)

    mask_full = jnp.zeros((T, Bp, AP), jnp.int32)
    if mask_seq is None:
        mask_full = mask_full.at[:, :B, :A].set(1)            # plain Categorical
    else:
        mask_full = mask_full.at[:, :B, :A].set(mask_seq.astype(jnp.int32))

    # TODO(synk): torch.distributions.Categorical.sample() uses torch's RNG stream;
    # here the same distribution is sampled via Gumbel-max with JAX-generated noise.
    gumbel = jax.random.gumbel(sample_key, (T, Bp, AP), jnp.float32)

    const2 = lambda t: (0, 0)
    step3 = lambda t: (t, 0, 0)

    out_shapes = (
        jax.ShapeDtypeStruct((T, Bp, AP), jnp.float32),  # probs (padded lanes = 0)
        jax.ShapeDtypeStruct((T, Bp, AP), jnp.float32),  # packed [log_prob, entropy, value]
        jax.ShapeDtypeStruct((T, Bp, AP), jnp.int32),    # action broadcast over lanes
        jax.ShapeDtypeStruct((Bp, GW), jnp.float32),     # final h_cat (actor|critic)
        jax.ShapeDtypeStruct((Bp, GW), jnp.float32),     # final c_cat (actor|critic)
    )

    outs = pl.pallas_call(
        functools.partial(_rollout_kernel, action_size=A),
        grid=(T,),
        in_specs=[
            pl.BlockSpec((None, Bp, F), step3),     # x_t
            pl.BlockSpec((Bp, GW), const2),         # h0
            pl.BlockSpec((Bp, GW), const2),         # c0
            pl.BlockSpec((F, 4 * GW), const2),      # fused input-projection weight
            pl.BlockSpec((GW, 4 * GW), const2),     # fused hidden-projection weight
            pl.BlockSpec((1, 4 * GW), const2),      # fused gate bias
            pl.BlockSpec((GW, AP), const2),         # fused policy+value head weight
            pl.BlockSpec((1, AP), const2),          # fused head bias
            pl.BlockSpec((None, Bp, AP), step3),    # mask_t
            pl.BlockSpec((None, Bp, AP), step3),    # gumbel_t
        ],
        out_specs=(
            pl.BlockSpec((None, Bp, AP), step3),
            pl.BlockSpec((None, Bp, AP), step3),
            pl.BlockSpec((None, Bp, AP), step3),
            pl.BlockSpec((Bp, GW), const2),         # resident recurrent state
            pl.BlockSpec((Bp, GW), const2),
        ),
        out_shape=out_shapes,
        compiler_params=pltpu.CompilerParams(dimension_semantics=("arbitrary",)),
    )(x, h0, c0,
      prep["w_ih"], prep["w_hh"], prep["b_gates"], prep["w_head"], prep["b_head"],
      mask_full, gumbel)

    probs_o, misc_o, act_o, h_o, c_o = outs
    action = act_o[:, :B, 0]
    policy = probs_o[:, :B, :A]
    log_prob = misc_o[:, :B, 0]
    entropy = misc_o[:, :B, 1]
    value = misc_o[:, :B, 2:3]
    states_out = [(h_o[:B, 0:H], c_o[:B, 0:H]),
                  (h_o[:B, H:2 * H], c_o[:B, H:2 * H])]
    return action, policy, log_prob, entropy, value, states_out


def lstm_actor_critic_forward(prep, obs, states=None, mask=None, sample_key=None,
                              *, hidden_size, action_size):
    """Exact single-step module semantics (obs: (B, C, H, W))."""
    mask_seq = None if mask is None else mask[None]
    a, p, lp, e, v, st = lstm_actor_critic_rollout(
        prep, obs[None], hidden_size=hidden_size, action_size=action_size,
        states=states, mask_seq=mask_seq, sample_key=sample_key)
    return a[0], p[0], lp[0], e[0], v[0], st


# ------------------------------------------------------------------------------- demo
if __name__ == "__main__":
    B, C, Hs, Ws = 2, 4, 16, 16
    T = 8
    hidden_size, action_size = 32, 8
    feature_size = C * Hs * Ws

    key = jax.random.PRNGKey(0)
    k_param, k_obs, k_mask, k_sample, k_sample2 = jax.random.split(key, 5)

    params = init_params(k_param, feature_size, action_size, hidden_size)
    prep = prepare_params(params, hidden_size, action_size, feature_size)

    obs_seq = jax.random.normal(k_obs, (T, B, C, Hs, Ws), jnp.float32)
    mask_seq = jax.random.bernoulli(k_mask, 0.7, (T, B, action_size))
    mask_seq = mask_seq.at[..., 0].set(True)   # at least one legal action per row

    # Full rollout: one pallas_call over all T timesteps.
    action, policy, log_prob, entropy, value, states = lstm_actor_critic_rollout(
        prep, obs_seq, hidden_size=hidden_size, action_size=action_size,
        states=None, mask_seq=mask_seq, sample_key=k_sample)
    jax.block_until_ready((action, policy, log_prob, entropy, value, states))

    # Single-step forward (module's exact signature) continuing from the rollout state.
    a1, p1, lp1, e1, v1, st1 = lstm_actor_critic_forward(
        prep, obs_seq[-1], states=states, mask=mask_seq[-1], sample_key=k_sample2,
        hidden_size=hidden_size, action_size=action_size)
    jax.block_until_ready((a1, p1, lp1, e1, v1, st1))

    # sanity checks
    assert action.shape == (T, B) and policy.shape == (T, B, action_size)
    assert value.shape == (T, B, 1)
    assert bool(jnp.all(jnp.isfinite(policy)))
    assert bool(jnp.all(jnp.isfinite(value)))
    assert bool(jnp.all(jnp.isfinite(log_prob))) and bool(jnp.all(jnp.isfinite(entropy)))
    assert bool(jnp.allclose(policy.sum(axis=-1), 1.0, atol=1e-3))
    assert bool(jnp.all((action >= 0) & (action < action_size)))
    picked = jnp.take_along_axis(mask_seq.astype(jnp.int32), action[..., None], axis=-1)
    assert bool(jnp.all(picked == 1))          # sampled actions respect the mask
    for (h_s, c_s) in states:
        assert h_s.shape == (B, hidden_size) and c_s.shape == (B, hidden_size)
        assert bool(jnp.all(jnp.isfinite(h_s))) and bool(jnp.all(jnp.isfinite(c_s)))
    assert a1.shape == (B,) and p1.shape == (B, action_size) and v1.shape == (B, 1)

    print("KERNEL_OK")
</pallas_src>

<mosaic_0001>
module attributes {stable_mosaic.version = 11 : i64} {
  func.func @_rollout_kernel(%arg0: i32, %arg1: memref<1x8x1024xbf16, #tpu.memory_space<vmem>>, %arg2: memref<8x128xf32, #tpu.memory_space<vmem>>, %arg3: memref<8x128xf32, #tpu.memory_space<vmem>>, %arg4: memref<1024x512xbf16, #tpu.memory_space<vmem>>, %arg5: memref<128x512xbf16, #tpu.memory_space<vmem>>, %arg6: memref<1x512xf32, #tpu.memory_space<vmem>>, %arg7: memref<128x128xbf16, #tpu.memory_space<vmem>>, %arg8: memref<1x128xf32, #tpu.memory_space<vmem>>, %arg9: memref<1x8x128xi32, #tpu.memory_space<vmem>>, %arg10: memref<1x8x128xf32, #tpu.memory_space<vmem>>, %arg11: memref<1x8x128xf32, #tpu.memory_space<vmem>>, %arg12: memref<1x8x128xf32, #tpu.memory_space<vmem>>, %arg13: memref<1x8x128xi32, #tpu.memory_space<vmem>>, %arg14: memref<8x128xf32, #tpu.memory_space<vmem>>, %arg15: memref<8x128xf32, #tpu.memory_space<vmem>>) attributes {dimension_semantics = [#tpu.dimension_semantics<arbitrary>], iteration_bounds = array<i64: 8>, scalar_prefetch = 0 : i64, scratch_operands = 0 : i64, tpu.core_type = #tpu.core_type<tc>, window_params = [{transform_indices = @transform_0, window_bounds = array<i64: 1, 8, 1024>}, {pipeline_mode = #tpu.pipeline_mode<synchronous>, transform_indices = @transform_1, window_bounds = array<i64: 8, 128>}, {pipeline_mode = #tpu.pipeline_mode<synchronous>, transform_indices = @transform_2, window_bounds = array<i64: 8, 128>}, {pipeline_mode = #tpu.pipeline_mode<synchronous>, transform_indices = @transform_3, window_bounds = array<i64: 1024, 512>}, {pipeline_mode = #tpu.pipeline_mode<synchronous>, transform_indices = @transform_4, window_bounds = array<i64: 128, 512>}, {pipeline_mode = #tpu.pipeline_mode<synchronous>, transform_indices = @transform_5, window_bounds = array<i64: 1, 512>}, {pipeline_mode = #tpu.pipeline_mode<synchronous>, transform_indices = @transform_6, window_bounds = array<i64: 128, 128>}, {pipeline_mode = #tpu.pipeline_mode<synchronous>, transform_indices = @transform_7, window_bounds = array<i64: 1, 128>}, {transform_indices = @transform_8, window_bounds = array<i64: 1, 8, 128>}, {transform_indices = @transform_9, window_bounds = array<i64: 1, 8, 128>}, {transform_indices = @transform_10, window_bounds = array<i64: 1, 8, 128>}, {transform_indices = @transform_11, window_bounds = array<i64: 1, 8, 128>}, {transform_indices = @transform_12, window_bounds = array<i64: 1, 8, 128>}, {pipeline_mode = #tpu.pipeline_mode<synchronous>, transform_indices = @transform_13, window_bounds = array<i64: 8, 128>}, {pipeline_mode = #tpu.pipeline_mode<synchronous>, transform_indices = @transform_14, window_bounds = array<i64: 8, 128>}]} {
    %c0_i32 = arith.constant 0 : i32
    %0 = arith.cmpi eq, %arg0, %c0_i32 : i32
    %1 = arith.extui %0 : i1 to i32
    %c0_i32_0 = arith.constant 0 : i32
    %2 = arith.cmpi ne, %1, %c0_i32_0 : i32
    scf.if %2 {
      %c0_55 = arith.constant 0 : index
      %c0_56 = arith.constant 0 : index
      %122 = vector.load %arg2[%c0_55, %c0_56] : memref<8x128xf32, #tpu.memory_space<vmem>>, vector<8x128xf32>
      %c0_57 = arith.constant 0 : index
      %c0_58 = arith.constant 0 : index
      %123 = vector.load %arg14[%c0_57, %c0_58] : memref<8x128xf32, #tpu.memory_space<vmem>>, vector<8x128xf32>
      tpu.vector_store %arg14[%c0_57, %c0_58], %122 {strides = array<i32>} : memref<8x128xf32, #tpu.memory_space<vmem>>, vector<8x128xf32>,
      %c0_59 = arith.constant 0 : index
      %c0_60 = arith.constant 0 : index
      %124 = vector.load %arg3[%c0_59, %c0_60] : memref<8x128xf32, #tpu.memory_space<vmem>>, vector<8x128xf32>
      %c0_61 = arith.constant 0 : index
      %c0_62 = arith.constant 0 : index
      %125 = vector.load %arg15[%c0_61, %c0_62] : memref<8x128xf32, #tpu.memory_space<vmem>>, vector<8x128xf32>
      tpu.vector_store %arg15[%c0_61, %c0_62], %124 {strides = array<i32>} : memref<8x128xf32, #tpu.memory_space<vmem>>, vector<8x128xf32>,
    } else {
    }
    %c0 = arith.constant 0 : index
    %c0_1 = arith.constant 0 : index
    %3 = vector.load %arg14[%c0, %c0_1] : memref<8x128xf32, #tpu.memory_space<vmem>>, vector<8x128xf32>
    %c0_2 = arith.constant 0 : index
    %c0_3 = arith.constant 0 : index
    %4 = vector.load %arg15[%c0_2, %c0_3] : memref<8x128xf32, #tpu.memory_space<vmem>>, vector<8x128xf32>
    %c0_4 = arith.constant 0 : index
    %c0_5 = arith.constant 0 : index
    %c0_6 = arith.constant 0 : index
    %5 = vector.load %arg1[%c0_4, %c0_5, %c0_6] : memref<1x8x1024xbf16, #tpu.memory_space<vmem>>, vector<1x8x1024xbf16>
    %6 = vector.shape_cast %5 : vector<1x8x1024xbf16> to vector<8x1024xbf16>
    %c0_7 = arith.constant 0 : index
    %c0_8 = arith.constant 0 : index
    %7 = vector.load %arg4[%c0_7, %c0_8] : memref<1024x512xbf16, #tpu.memory_space<vmem>>, vector<1024x512xbf16>
    %cst = arith.constant dense<0.000000e+00> : vector<8x512xf32>
    %8 = tpu.matmul %6, %7, %cst {dimension_numbers = #tpu.dot_dimension_numbers<[1], [0], [0], [1], [0, 0, 1, 1], [], []>} : vector<8x1024xbf16>, vector<1024x512xbf16>, vector<8x512xf32> -> vector<8x512xf32>
    %9 = arith.truncf %3 : vector<8x128xf32> to vector<8x128xbf16>
    %c0_9 = arith.constant 0 : index
    %c0_10 = arith.constant 0 : index
    %10 = vector.load %arg5[%c0_9, %c0_10] : memref<128x512xbf16, #tpu.memory_space<vmem>>, vector<128x512xbf16>
    %cst_11 = arith.constant dense<0.000000e+00> : vector<8x512xf32>
    %11 = tpu.matmul %9, %10, %cst_11 {dimension_numbers = #tpu.dot_dimension_numbers<[1], [0], [0], [1], [0, 0, 1, 1], [], []>} : vector<8x128xbf16>, vector<128x512xbf16>, vector<8x512xf32> -> vector<8x512xf32>
    %12 = arith.addf %8, %11 : vector<8x512xf32>
    %c0_12 = arith.constant 0 : index
    %c0_13 = arith.constant 0 : index
    %13 = vector.load %arg6[%c0_12, %c0_13] : memref<1x512xf32, #tpu.memory_space<vmem>>, vector<1x512xf32>
    %14 = vector.broadcast %13 : vector<1x512xf32> to vector<8x512xf32>
    %15 = arith.addf %12, %14 : vector<8x512xf32>
    %16 = vector.extract_strided_slice %15 {offsets = [0, 0], sizes = [8, 128], strides = [1, 1]} : vector<8x512xf32> to vector<8x128xf32>
    %17 = arith.negf %16 : vector<8x128xf32>
    %18 = math.exp %17 : vector<8x128xf32>
    %cst_14 = arith.constant 1.000000e+00 : f32
    %19 = vector.broadcast %cst_14 : f32 to vector<8x128xf32>
    %20 = arith.addf %19, %18 : vector<8x128xf32>
    %21 = arith.divf %19, %20 : vector<8x128xf32>
    %22 = vector.extract_strided_slice %15 {offsets = [0, 128], sizes = [8, 128], strides = [1, 1]} : vector<8x512xf32> to vector<8x128xf32>
    %23 = arith.negf %22 : vector<8x128xf32>
    %24 = math.exp %23 : vector<8x128xf32>
    %cst_15 = arith.constant 1.000000e+00 : f32
    %25 = vector.broadcast %cst_15 : f32 to vector<8x128xf32>
    %26 = arith.addf %25, %24 : vector<8x128xf32>
    %27 = arith.divf %25, %26 : vector<8x128xf32>
    %28 = vector.extract_strided_slice %15 {offsets = [0, 256], sizes = [8, 128], strides = [1, 1]} : vector<8x512xf32> to vector<8x128xf32>
    %29 = math.tanh %28 : vector<8x128xf32>
    %30 = vector.extract_strided_slice %15 {offsets = [0, 384], sizes = [8, 128], strides = [1, 1]} : vector<8x512xf32> to vector<8x128xf32>
    %31 = arith.negf %30 : vector<8x128xf32>
    %32 = math.exp %31 : vector<8x128xf32>
    %cst_16 = arith.constant 1.000000e+00 : f32
    %33 = vector.broadcast %cst_16 : f32 to vector<8x128xf32>
    %34 = arith.addf %33, %32 : vector<8x128xf32>
    %35 = arith.divf %33, %34 : vector<8x128xf32>
    %36 = arith.mulf %27, %4 : vector<8x128xf32>
    %37 = arith.mulf %21, %29 : vector<8x128xf32>
    %38 = arith.addf %36, %37 : vector<8x128xf32>
    %39 = math.tanh %38 : vector<8x128xf32>
    %40 = arith.mulf %35, %39 : vector<8x128xf32>
    %c0_17 = arith.constant 0 : index
    %c0_18 = arith.constant 0 : index
    %41 = vector.load %arg14[%c0_17, %c0_18] : memref<8x128xf32, #tpu.memory_space<vmem>>, vector<8x128xf32>
    tpu.vector_store %arg14[%c0_17, %c0_18], %40 {strides = array<i32>} : memref<8x128xf32, #tpu.memory_space<vmem>>, vector<8x128xf32>,
    %c0_19 = arith.constant 0 : index
    %c0_20 = arith.constant 0 : index
    %42 = vector.load %arg15[%c0_19, %c0_20] : memref<8x128xf32, #tpu.memory_space<vmem>>, vector<8x128xf32>
    tpu.vector_store %arg15[%c0_19, %c0_20], %38 {strides = array<i32>} : memref<8x128xf32, #tpu.memory_space<vmem>>, vector<8x128xf32>,
    %43 = arith.truncf %40 : vector<8x128xf32> to vector<8x128xbf16>
    %c0_21 = arith.constant 0 : index
    %c0_22 = arith.constant 0 : index
    %44 = vector.load %arg7[%c0_21, %c0_22] : memref<128x128xbf16, #tpu.memory_space<vmem>>, vector<128x128xbf16>
    %cst_23 = arith.constant dense<0.000000e+00> : vector<8x128xf32>
    %45 = tpu.matmul %43, %44, %cst_23 {dimension_numbers = #tpu.dot_dimension_numbers<[1], [0], [0], [1], [0, 0, 1, 1], [], []>} : vector<8x128xbf16>, vector<128x128xbf16>, vector<8x128xf32> -> vector<8x128xf32>
    %c0_24 = arith.constant 0 : index
    %c0_25 = arith.constant 0 : index
    %46 = vector.load %arg8[%c0_24, %c0_25] : memref<1x128xf32, #tpu.memory_space<vmem>>, vector<1x128xf32>
    %47 = vector.broadcast %46 : vector<1x128xf32> to vector<8x128xf32>
    %48 = arith.addf %45, %47 : vector<8x128xf32>
    %c0_26 = arith.constant 0 : index
    %c0_27 = arith.constant 0 : index
    %c0_28 = arith.constant 0 : index
    %49 = vector.load %arg9[%c0_26, %c0_27, %c0_28] : memref<1x8x128xi32, #tpu.memory_space<vmem>>, vector<1x8x128xi32>
    %50 = vector.shape_cast %49 : vector<1x8x128xi32> to vector<8x128xi32>
    %c0_i32_29 = arith.constant 0 : i32
    %51 = vector.broadcast %c0_i32_29 : i32 to vector<8x128xi32>
    %52 = arith.cmpi ne, %50, %51 : vector<8x128xi32>
    %cst_30 = arith.constant -3.40282347E+38 : f32
    %53 = vector.broadcast %cst_30 : f32 to vector<8x128xf32>
    %54 = arith.select %52, %48, %53 : vector<8x128xi1>, vector<8x128xf32>
    %cst_31 = arith.constant dense<0xFF800000> : vector<8xf32>
    %55 = vector.multi_reduction <maximumf>, %54, %cst_31 [1] : vector<8x128xf32> to vector<8xf32>
    %56 = vector.shape_cast %55 : vector<8xf32> to vector<8x1xf32>
    %57 = vector.broadcast %56 : vector<8x1xf32> to vector<8x128xf32>
    %58 = arith.subf %54, %57 : vector<8x128xf32>
    %59 = math.exp %58 : vector<8x128xf32>
    %cst_32 = arith.constant dense<0.000000e+00> : vector<8xf32>
    %60 = vector.multi_reduction <add>, %59, %cst_32 [1] : vector<8x128xf32> to vector<8xf32>
    %61 = vector.shape_cast %60 : vector<8xf32> to vector<8x1xf32>
    %62 = math.log %61 : vector<8x1xf32>
    %63 = arith.addf %56, %62 : vector<8x1xf32>
    %64 = vector.broadcast %63 : vector<8x1xf32> to vector<8x128xf32>
    %65 = arith.subf %54, %64 : vector<8x128xf32>
    %66 = math.exp %65 : vector<8x128xf32>
    %cst_33 = arith.constant -1.000000e+30 : f32
    %67 = vector.broadcast %cst_33 : f32 to vector<8x128xf32>
    %68 = arith.select %52, %48, %67 : vector<8x128xi1>, vector<8x128xf32>
    %c0_34 = arith.constant 0 : index
    %c0_35 = arith.constant 0 : index
    %c0_36 = arith.constant 0 : index
    %69 = vector.load %arg10[%c0_34, %c0_35, %c0_36] : memref<1x8x128xf32, #tpu.memory_space<vmem>>, vector<1x8x128xf32>
    %70 = vector.shape_cast %69 : vector<1x8x128xf32> to vector<8x128xf32>
    %71 = arith.addf %68, %70 : vector<8x128xf32>
    %cst_37 = arith.constant dense<0xFF800000> : vector<8xf32>
    %72 = vector.multi_reduction <maximumf>, %71, %cst_37 [1] : vector<8x128xf32> to vector<8xf32>
    %73 = vector.shape_cast %72 : vector<8xf32> to vector<8x1xf32>
    %74 = tpu.iota {dimensions = array<i32: 1>} : vector<8x128xi32>
    %75 = vector.broadcast %73 : vector<8x1xf32> to vector<8x128xf32>
    %76 = arith.cmpf oeq, %71, %75 : vector<8x128xf32>
    %c128_i32 = arith.constant 128 : i32
    %77 = vector.broadcast %c128_i32 : i32 to vector<8x128xi32>
    %78 = arith.select %76, %74, %77 : vector<8x128xi1>, vector<8x128xi32>
    %cst_38 = arith.constant dense<2147483647> : vector<8xi32>
    %79 = vector.multi_reduction <minsi>, %78, %cst_38 [1] : vector<8x128xi32> to vector<8xi32>
    %80 = vector.shape_cast %79 : vector<8xi32> to vector<8x1xi32>
    %81 = vector.broadcast %80 : vector<8x1xi32> to vector<8x128xi32>
    %82 = arith.cmpi eq, %74, %81 : vector<8x128xi32>
    %cst_39 = arith.constant 0.000000e+00 : f32
    %83 = vector.broadcast %cst_39 : f32 to vector<8x128xf32>
    %84 = arith.select %82, %65, %83 : vector<8x128xi1>, vector<8x128xf32>
    %cst_40 = arith.constant dense<0.000000e+00> : vector<8xf32>
    %85 = vector.multi_reduction <add>, %84, %cst_40 [1] : vector<8x128xf32> to vector<8xf32>
    %86 = vector.shape_cast %85 : vector<8xf32> to vector<8x1xf32>
    %87 = arith.mulf %65, %66 : vector<8x128xf32>
    %cst_41 = arith.constant 0.000000e+00 : f32
    %88 = vector.broadcast %cst_41 : f32 to vector<8x128xf32>
    %89 = arith.select %52, %87, %88 : vector<8x128xi1>, vector<8x128xf32>
    %cst_42 = arith.constant dense<0.000000e+00> : vector<8xf32>
    %90 = vector.multi_reduction <add>, %89, %cst_42 [1] : vector<8x128xf32> to vector<8xf32>
    %91 = vector.shape_cast %90 : vector<8xf32> to vector<8x1xf32>
    %cst_43 = arith.constant 0.000000e+00 : f32
    %92 = vector.broadcast %cst_43 : f32 to vector<8x1xf32>
    %93 = arith.subf %92, %91 : vector<8x1xf32>
    %94 = vector.extract_strided_slice %48 {offsets = [0, 8], sizes = [8, 1], strides = [1, 1]} : vector<8x128xf32> to vector<8x1xf32>
    %c0_44 = arith.constant 0 : index
    %c0_45 = arith.constant 0 : index
    %c0_46 = arith.constant 0 : index
    %95 = vector.load %arg11[%c0_44, %c0_45, %c0_46] : memref<1x8x128xf32, #tpu.memory_space<vmem>>, vector<1x8x128xf32>
    %96 = vector.shape_cast %95 : vector<1x8x128xf32> to vector<8x128xf32>
    %97 = vector.shape_cast %66 : vector<8x128xf32> to vector<1x8x128xf32>
    tpu.vector_store %arg11[%c0_44, %c0_45, %c0_46], %97 {strides = array<i32>} : memref<1x8x128xf32, #tpu.memory_space<vmem>>, vector<1x8x128xf32>,
    %98 = vector.shape_cast %80 : vector<8x1xi32> to vector<8x1xi32>
    %99 = vector.broadcast %98 : vector<8x1xi32> to vector<8x128xi32>
    %c0_47 = arith.constant 0 : index
    %c0_48 = arith.constant 0 : index
    %c0_49 = arith.constant 0 : index
    %100 = vector.load %arg13[%c0_47, %c0_48, %c0_49] : memref<1x8x128xi32, #tpu.memory_space<vmem>>, vector<1x8x128xi32>
    %101 = vector.shape_cast %100 : vector<1x8x128xi32> to vector<8x128xi32>
    %102 = vector.shape_cast %99 : vector<8x128xi32> to vector<1x8x128xi32>
    tpu.vector_store %arg13[%c0_47, %c0_48, %c0_49], %102 {strides = array<i32>} : memref<1x8x128xi32, #tpu.memory_space<vmem>>, vector<1x8x128xi32>,
    %c0_i32_50 = arith.constant 0 : i32
    %103 = vector.broadcast %c0_i32_50 : i32 to vector<8x128xi32>
    %104 = arith.cmpi eq, %74, %103 : vector<8x128xi32>
    %c1_i32 = arith.constant 1 : i32
    %105 = vector.broadcast %c1_i32 : i32 to vector<8x128xi32>
    %106 = arith.cmpi eq, %74, %105 : vector<8x128xi32>
    %c2_i32 = arith.constant 2 : i32
    %107 = vector.broadcast %c2_i32 : i32 to vector<8x128xi32>
    %108 = arith.cmpi eq, %74, %107 : vector<8x128xi32>
    %cst_51 = arith.constant 0.000000e+00 : f32
    %109 = vector.shape_cast %94 : vector<8x1xf32> to vector<8x1xf32>
    %110 = vector.broadcast %109 : vector<8x1xf32> to vector<8x128xf32>
    %111 = vector.broadcast %cst_51 : f32 to vector<8x128xf32>
    %112 = arith.select %108, %110, %111 : vector<8x128xi1>, vector<8x128xf32>
    %113 = vector.shape_cast %93 : vector<8x1xf32> to vector<8x1xf32>
    %114 = vector.broadcast %113 : vector<8x1xf32> to vector<8x128xf32>
    %115 = arith.select %106, %114, %112 : vector<8x128xi1>, vector<8x128xf32>
    %116 = vector.shape_cast %86 : vector<8x1xf32> to vector<8x1xf32>
    %117 = vector.broadcast %116 : vector<8x1xf32> to vector<8x128xf32>
    %118 = arith.select %104, %117, %115 : vector<8x128xi1>, vector<8x128xf32>
    %c0_52 = arith.constant 0 : index
    %c0_53 = arith.constant 0 : index
    %c0_54 = arith.constant 0 : index
    %119 = vector.load %arg12[%c0_52, %c0_53, %c0_54] : memref<1x8x128xf32, #tpu.memory_space<vmem>>, vector<1x8x128xf32>
    %120 = vector.shape_cast %119 : vector<1x8x128xf32> to vector<8x128xf32>
    %121 = vector.shape_cast %118 : vector<8x128xf32> to vector<1x8x128xf32>
    tpu.vector_store %arg12[%c0_52, %c0_53, %c0_54], %121 {strides = array<i32>} : memref<1x8x128xf32, #tpu.memory_space<vmem>>, vector<1x8x128xf32>,
    return
  }
  func.func @transform_0(%arg0: i32) -> (i32, i32, i32) {
    %c0_i32 = arith.constant 0 : i32
    %c0_i32_0 = arith.constant 0 : i32
    %c0_i32_1 = arith.constant 0 : i32
    return %arg0, %c0_i32, %c0_i32_0 : i32, i32, i32
  }
  func.func @transform_1(%arg0: i32) -> (i32, i32) {
    %c0_i32 = arith.constant 0 : i32
    %c0_i32_0 = arith.constant 0 : i32
    %c0_i32_1 = arith.constant 0 : i32
    return %c0_i32, %c0_i32_0 : i32, i32
  }
  func.func @transform_2(%arg0: i32) -> (i32, i32) {
    %c0_i32 = arith.constant 0 : i32
    %c0_i32_0 = arith.constant 0 : i32
    %c0_i32_1 = arith.constant 0 : i32
    return %c0_i32, %c0_i32_0 : i32, i32
  }
  func.func @transform_3(%arg0: i32) -> (i32, i32) {
    %c0_i32 = arith.constant 0 : i32
    %c0_i32_0 = arith.constant 0 : i32
    %c0_i32_1 = arith.constant 0 : i32
    return %c0_i32, %c0_i32_0 : i32, i32
  }
  func.func @transform_4(%arg0: i32) -> (i32, i32) {
    %c0_i32 = arith.constant 0 : i32
    %c0_i32_0 = arith.constant 0 : i32
    %c0_i32_1 = arith.constant 0 : i32
    return %c0_i32, %c0_i32_0 : i32, i32
  }
  func.func @transform_5(%arg0: i32) -> (i32, i32) {
    %c0_i32 = arith.constant 0 : i32
    %c0_i32_0 = arith.constant 0 : i32
    %c0_i32_1 = arith.constant 0 : i32
    return %c0_i32, %c0_i32_0 : i32, i32
  }
  func.func @transform_6(%arg0: i32) -> (i32, i32) {
    %c0_i32 = arith.constant 0 : i32
    %c0_i32_0 = arith.constant 0 : i32
    %c0_i32_1 = arith.constant 0 : i32
    return %c0_i32, %c0_i32_0 : i32, i32
  }
  func.func @transform_7(%arg0: i32) -> (i32, i32) {
    %c0_i32 = arith.constant 0 : i32
    %c0_i32_0 = arith.constant 0 : i32
    %c0_i32_1 = arith.constant 0 : i32
    return %c0_i32, %c0_i32_0 : i32, i32
  }
  func.func @transform_8(%arg0: i32) -> (i32, i32, i32) {
    %c0_i32 = arith.constant 0 : i32
    %c0_i32_0 = arith.constant 0 : i32
    %c0_i32_1 = arith.constant 0 : i32
    return %arg0, %c0_i32, %c0_i32_0 : i32, i32, i32
  }
  func.func @transform_9(%arg0: i32) -> (i32, i32, i32) {
    %c0_i32 = arith.constant 0 : i32
    %c0_i32_0 = arith.constant 0 : i32
    %c0_i32_1 = arith.constant 0 : i32
    return %arg0, %c0_i32, %c0_i32_0 : i32, i32, i32
  }
  func.func @transform_10(%arg0: i32) -> (i32, i32, i32) {
    %c0_i32 = arith.constant 0 : i32
    %c0_i32_0 = arith.constant 0 : i32
    %c0_i32_1 = arith.constant 0 : i32
    return %arg0, %c0_i32, %c0_i32_0 : i32, i32, i32
  }
  func.func @transform_11(%arg0: i32) -> (i32, i32, i32) {
    %c0_i32 = arith.constant 0 : i32
    %c0_i32_0 = arith.constant 0 : i32
    %c0_i32_1 = arith.constant 0 : i32
    return %arg0, %c0_i32, %c0_i32_0 : i32, i32, i32
  }
  func.func @transform_12(%arg0: i32) -> (i32, i32, i32) {
    %c0_i32 = arith.constant 0 : i32
    %c0_i32_0 = arith.constant 0 : i32
    %c0_i32_1 = arith.constant 0 : i32
    return %arg0, %c0_i32, %c0_i32_0 : i32, i32, i32
  }
  func.func @transform_13(%arg0: i32) -> (i32, i32) {
    %c0_i32 = arith.constant 0 : i32
    %c0_i32_0 = arith.constant 0 : i32
    %c0_i32_1 = arith.constant 0 : i32
    return %c0_i32, %c0_i32_0 : i32, i32
  }
  func.func @transform_14(%arg0: i32) -> (i32, i32) {
    %c0_i32 = arith.constant 0 : i32
    %c0_i32_0 = arith.constant 0 : i32
    %c0_i32_1 = arith.constant 0 : i32
    return %c0_i32, %c0_i32_0 : i32, i32
  }
}

</mosaic_0001>

<bundles_post_ra>
// kernel: tpu_custom_call.1
= control target key start
LH: loop header
LB: loop body
LE: loop exit
PB: predicated region body
PF: predicated region fallthrough
CT: control target
= control target key end

     0   :  { %s5469_s0 = inlined_call_operand.hbm [shape: bf16[8,8,1024], index: 0, kind: input, shape index: {}]   ;;  %s5470_s1 = inlined_call_operand.hbm [shape: f32[8,128], index: 1, kind: input, shape index: {}]   ;;  %s5471_s2 = inlined_call_operand.hbm [shape: f32[8,128], index: 2, kind: input, shape index: {}]   ;;  %s5472_s3 = inlined_call_operand.hbm [shape: bf16[1024,512], index: 3, kind: input, shape index: {}]   ;;  %s5473_s4 = inlined_call_operand.hbm [shape: bf16[128,512], index: 4, kind: input, shape index: {}]   ;;  %s5474_s5 = inlined_call_operand.vmem [shape: f32[1,512], index: 5, kind: input, shape index: {}]   ;;  %s5475_s6 = inlined_call_operand.hbm [shape: bf16[128,128], index: 6, kind: input, shape index: {}]   ;;  %s5476_s7 = inlined_call_operand.vmem [shape: f32[1,128], index: 7, kind: input, shape index: {}]   ;;  %s5477_s8 = inlined_call_operand.hbm [shape: s32[8,8,128], index: 8, kind: input, shape index: {}]   ;;  %s5478_s9 = inlined_call_operand.hbm [shape: f32[8,8,128], index: 9, kind: input, shape index: {}]   ;;  %s5479_s10 = inlined_call_operand.hbm [shape: f32[8,8,128], index: 10, kind: output, shape index: {0}]   ;;  %s5480_s11 = inlined_call_operand.hbm [shape: f32[8,8,128], index: 11, kind: output, shape index: {1}]   ;;  %s5481_s12 = inlined_call_operand.hbm [shape: s32[8,8,128], index: 12, kind: output, shape index: {2}]   ;;  %s5482_s13 = inlined_call_operand.hbm [shape: f32[8,128], index: 13, kind: output, shape index: {3}]   ;;  %s5483_s14 = inlined_call_operand.hbm [shape: f32[8,128], index: 14, kind: output, shape index: {4}]  }
   0x1   :  { %5511 = sst [smem:[#allocation36_spill]] %s5469_s0 }
   0x2   :  { %5512 = sst [smem:[#allocation37_spill]] %s5470_s1 }
   0x3   :  { %5513 = sst [smem:[#allocation38_spill]] %s5474_s5 }
   0x4   :  { %5514 = sst [smem:[#allocation39_spill]] %s5476_s7 }
   0x5   :  { %5515 = sst [smem:[#allocation40_spill]] %s5479_s10 }
   0x6   :  { %5516 = sst [smem:[#allocation41_spill]] %s5480_s11 }
   0x7   :  { %5517 = sst [smem:[#allocation42_spill]] %s5481_s12 }
   0x8   :  { %5518 = sst [smem:[#allocation43_spill]] %s5482_s13 }
   0x9   :  { %5519 = sst [smem:[#allocation44_spill]] %s5483_s14 }
   0xa   :  { %20 = vsyncpa [#allocation3], 0 }
   0xb   :  { %22 = vsyncpa [#allocation3 + $0x1], 0 }
   0xc   :  { %23 = vsyncpa [#allocation6], 0 }
   0xd   :  { %24 = vsyncpa [#allocation9], 0 }
   0xe   :  { %25 = vsyncpa [#allocation12], 0 }
   0xf   :  { %26 = vsyncpa [#allocation4], 0 }
  0x10   :  { %28 = vsyncpa [#allocation4 + $0x1], 0 }
  0x11   :  { %29 = vsyncpa [#allocation17], 0 }
  0x12   :  { %31 = vsyncpa [#allocation17 + $0x1], 0 }
  0x13   :  { %32 = vsyncpa [#allocation20], 0  ;;  %s4869_s29 = smov 0   ;;  %s4871_s30 = smov 0  }
  0x14   :  { %s4873_s15 = smov 0   ;;  %s4875_s16 = smov 0  }
  0x15 LB: > { %5520 = sst [smem:[#allocation30_spill]] %s4759_s29  ;;  %s4890_s17 = sadd.s32 4294967295, %s4771_s16   ;;  %s4771_s16 = sphi %s4875_s16, %s5575_s16   ;;  %s4767_s15 = sphi %s4873_s15, %s5577_s15   ;;  %s4763_s30 = sphi %s4871_s30, %s5579_s30   ;;  %s4759_s29 = sphi %s4869_s29, %s5578_s29  }
  0x16   : > { %5521 = sst [smem:[#allocation31_spill]] %s4767_s15  ;;  %s5487_s18 = sadd.s32 4294967294, %s4771_s16  }
  0x17   : > { %s4894_s19 = sadd.s32 1, %s4771_s16   ;;  %s45_s20 = sadd.s32 1, %s4767_s15 }
  0x18   : > { %5522 = sst [smem:[#allocation32_spill]] %s4894_s19  ;;  %s42_s21 = ssub.s32 %s4771_s16, %s4894_s19 }
  0x19   : > { %p52_p0 = scmp.ne.s32.totalorder %s4767_s15, %s4763_s30  ;;  %p43_p1 = scmp.eq.s32.totalorder %s42_s21, 0 }
  0x1a   : > { %p53_p2 = scmp.eq.s32.totalorder %s4771_s16, 0  ;;  %p58_p3 = scmp.ne.s32.totalorder %s4763_s30, %s4759_s29 }
  0x1b   : > { %p5493_p4 = scmp.eq.s32.totalorder %s4890_s17, 0  ;;  %p5492_p7 = scmp.eq.s32.totalorder %s4890_s17, 7 }
  0x1c   : > { %s4906_s22 = scalar_select %p43_p1, %s4767_s15, %s45_s20  }
  0x1d   : > { %p4908_p5 = por %p53_p2, %p52_p0  ;;  %p4914_p6 = por %p5493_p4, %p58_p3 }
  0x1e   : > { %5523 = sst [smem:[#allocation33_spill]] %s4906_s22  ;;  %p287_p8 = scmp.eq.s32.totalorder %s5487_s18, 7 }
  0x1f   : > { %s5525_s24 = scalar_select %p4914_p6, 1, 0 }
  0x20   : > { %p4924_p10 = por %p5492_p7, %p52_p0  ;;  %p4928_p11 = por %p287_p8, %p58_p3 }
  0x21   : > { %p3813_p12 = scmp.lt.s32.totalorder %s4771_s16, 8  ;;  %s468_s27 = sand.u32 1, %s4771_s16  }
  0x22   : > { %s5526_s25 = scalar_select %p4924_p10, 1, 0 }
  0x23   : > { %s5528_s26 = scalar_select %p4928_p11, 1, 0 }
  0x24   : > { %5527 = sst [smem:[#allocation34_spill]] %s5526_s25  ;;  %s470_s28 = sand.u32 1, %s4767_s15  }
  0x25   : > { %5529 = sst [smem:[#allocation35_spill]] %s5528_s26  ;;  %s3362_s20 = sshll.u32 %s470_s28, 5 }
  0x26   : > { %s3702_s21 = sshll.u32 %s4771_s16, 9  ;;  %s5530_s0 = sld [smem:[#allocation36_spill]] }
  0x27   : > { %s472_s18 = scalar_lea.vmem [#allocation2], %s3362_s20  ;;  %p4943_p13 = pnand %p3813_p12, %p4908_p5 }
  0x28   : > { %s480_s12 = sshll.u32 %s472_s18, 4  ;;  %s4949_s15 = sshll.u32 %s470_s28, 3  ;;  %s4947_s12 = int_to_ptr.vmem [resolvable:$true] %s480_s12 }
  0x29   : > { %s5531_s11 = scalar_select %p4943_p13, 1, 0 }
  0x2a   : > { %s4952_s19 = scalar_lea.sflag [#allocation3], %s468_s27  ;;  %p4958_p2 = pneg %p4943_p13 }
  0x2c   : > { %s4939_s29 = scalar_lea.hbm %s5530_s0, %s3702_s21  ;;  %s4348_s21 = scalar_lea.hbm %s5530_s0, 4096 }
  0x2d   : > { %s4343_s22 = scalar_lea.hbm %s4939_s29, 512  ;;  %p4349_p8 = scmp.lt.u32.totalorder %s4939_s29, %s5530_s0 }
  0x2e   : > { %p4344_p1 = scmp.ne.s32.totalorder %s4939_s29, %s4343_s22  ;;  %p4350_p12 = scmp.lt.u32.totalorder %s4348_s21, %s4343_s22 }
  0x2f   : > { %s5532_s20 = scalar_select %p4958_p2, 1, 0 }
  0x30   : > { %p4346_p3 = pnand %p4958_p2, %p4344_p1  ;;  %p4351_p7 = por %p4350_p12, %p4349_p8 }
  0x31   : > { %p4352_p9 = scmp.lt.u32.totalorder %s4343_s22, %s4939_s29 }
  0x32   : > { %p4347_p5 = pneg %p4346_p3 }
  0x33   : > { %p4353_p4 = por %p4352_p9, %p4351_p7 }
  0x35   : > { %p4354_p0 = pnand %p4353_p4, %p4347_p5 }
  0x37   : > { %4357 = shalt.err (!%p4354_p0)
}
  0x38   : > { %s4358_s27 = scalar_lea.vmem %s4947_s12, 512  ;;  %s4773_s18 = smov [#allocation2]  }
  0x39   : > { %p4359_p1 = scmp.ne.s32.totalorder %s4947_s12, %s4358_s27  ;;  %s4363_s23 = sshll.u32 %s4773_s18, 4  ;;  %s4364_s23 = int_to_ptr.vmem [resolvable:$false] %s4363_s23 }
  0x3a   : > { %s4365_s26 = scalar_lea.vmem %s4364_s23, 1024  ;;  %p4366_p10 = scmp.lt.s32.totalorder %s4947_s12, %s4364_s23 }
  0x3b   : > { %p4361_p3 = pnand %p4359_p1, %p4958_p2  ;;  %p4367_p6 = scmp.lt.s32.totalorder %s4365_s26, %s4358_s27 }
  0x3d   : > { %p4362_p11 = pneg %p4361_p3  ;;  %p4368_p8 = por %p4367_p6, %p4366_p10 }
  0x3f   : > { %p4369_p12 = pnand %p4368_p8, %p4362_p11 }
  0x41   : > { %4372 = shalt.err (!%p4369_p12)
}
  0x42   : > { %3791 = dma.hbm_to_vmem [thread:$0]  (!%p4943_p13), %s4939_s29, 512, %s4947_s12, %s4952_s19  }
  0x43   : > { %p388_p4 = scmp.lt.s32.totalorder %s4771_s16, 9  ;;  %s4774_s22 = smov [#allocation5]  }
  0x44   : > { %s401_s21 = sshll.u32 %s4774_s22, 4  ;;  %p5533_p7 = scmp.ge.s32.totalorder %s4771_s16, 1  ;;  %s402_s21 = int_to_ptr.vmem [resolvable:$true] %s401_s21 }
  0x45   : > { %s4775_s27 = smov [#allocation8]   ;;  %p5535_p10 = scmp.eq.s32.totalorder %s4890_s17, 0 }
  0x46   : > { %p4985_p9 = pnand %p5533_p7, %p388_p4  ;;  %s422_s18 = sshll.u32 %s4775_s27, 4  ;;  %s4991_s18 = int_to_ptr.vmem [resolvable:$true] %s422_s18 }
  0x47   : > { %s5506_s12 = sshll.u32 %s4771_s16, 7  ;;  %s491_s0 = scalar_lea.vmem [#allocation13], %s4949_s15 }
  0x48   : > { %s5534_s28 = scalar_select %p4985_p9, 1, 0 }
  0x49   : > { %p3772_p6 = pneg %p4985_p9  ;;  %s5005_s22 = scalar_lea.hbm %s5477_s8, %s5506_s12 }
  0x4a   : > { %s498_s14 = sshll.u32 %s491_s0, 4  ;;  %s5537_s1 = sld [smem:[#allocation37_spill]]  ;;  %s5008_s14 = int_to_ptr.vmem [resolvable:$true] %s498_s14 }
  0x4b   : > { %p4995_p11 = pnand %p3772_p6, %p5535_p10 }
  0x4d   : > { %s5536_s23 = scalar_select %p4995_p11, 1, 0 }
  0x4e   : > { %p5018_p5 = pneg %p4995_p11 }
  0x50   : > { %s4373_s25 = scalar_lea.hbm %s5537_s1, 128 }
  0x51   : > { %p4374_p0 = scmp.ne.s32.totalorder %s5537_s1, %s4373_s25  ;;  %p4380_p8 = scmp.lt.u32.totalorder %s4373_s25, %s5537_s1 }
  0x53   : > { %p4376_p1 = pnand %p5018_p5, %p4374_p0 }
  0x55   : > { %p4377_p3 = pneg %p4376_p1 }
  0x57   : > { %p4382_p12 = pnand %p4380_p8, %p4377_p3 }
  0x59   : > { %4385 = shalt.err (!%p4382_p12)
}
  0x5a   : > { %s4386_s10 = scalar_lea.vmem %s402_s21, 128  ;;  %p4394_p10 = scmp.lt.s32.totalorder %s402_s21, %s402_s21 }
  0x5b   : > { %p4387_p4 = scmp.ne.s32.totalorder %s402_s21, %s4386_s10  ;;  %p4395_p9 = scmp.lt.s32.totalorder %s4386_s10, %s4386_s10 }
  0x5d   : > { %p4389_p7 = pnand %p4387_p4, %p5018_p5  ;;  %p4396_p13 = por %p4395_p9, %p4394_p10 }
  0x5f   : > { %p4390_p6 = pneg %p4389_p7 }
  0x61   : > { %p4397_p2 = pnand %p4396_p13, %p4390_p6 }
  0x63   : > { %4400 = shalt.err (!%p4397_p2)
}
  0x64   : > { %3775 = dma.hbm_to_vmem [thread:$0]  (!%p4995_p11), %s5537_s1, 128, %s402_s21, [#allocation6]  }
  0x65   : > { %s4401_s27 = scalar_lea.hbm %s5472_s3, 32768 }
  0x66   : > { %p4402_p0 = scmp.ne.s32.totalorder %s5472_s3, %s4401_s27  ;;  %p4408_p13 = scmp.lt.u32.totalorder %s4401_s27, %s5472_s3 }
  0x68   : > { %p4404_p1 = pnand %p4402_p0, %p5018_p5 }
  0x6a   : > { %p4405_p9 = pneg %p4404_p1 }
  0x6c   : > { %p4410_p2 = pnand %p4408_p13, %p4405_p9 }
  0x6e   : > { %4413 = shalt.err (!%p4410_p2)
}
  0x6f   : > { %s4414_s21 = scalar_lea.vmem %s4991_s18, 32768  ;;  %p4422_p4 = scmp.lt.s32.totalorder %s4991_s18, %s4991_s18 }
  0x70   : > { %p4415_p3 = scmp.ne.s32.totalorder %s4991_s18, %s4414_s21  ;;  %p4423_p7 = scmp.lt.s32.totalorder %s4414_s21, %s4414_s21 }
  0x72   : > { %p4417_p8 = pnand %p4415_p3, %p5018_p5  ;;  %p4424_p6 = por %p4423_p7, %p4422_p4 }
  0x74   : > { %p4418_p12 = pneg %p4417_p8 }
  0x76   : > { %p4425_p10 = pnand %p4424_p6, %p4418_p12 }
  0x78   : > { %4428 = shalt.err (!%p4425_p10)
}
  0x79   : > { %s5509_s7 = smov 256   ;;  %s4777_s12 = smov 16  }
  0x7a   : > { %3781 = dma.hbm_to_vmem [thread:$0]  (!%p4995_p11), %s5472_s3, 32768, %s4991_s18, [#allocation9], %s5509_s7, %s5509_s7, %s4777_s12  }
  0x7b   : > { %s4429_s26 = scalar_lea.hbm %s5005_s22, 128  ;;  %p5539_p1 = scmp.ne.s32.totalorder %s5532_s20, 0 }
  0x7c   : > { %p4430_p0 = scmp.ne.s32.totalorder %s5005_s22, %s4429_s26  ;;  %s4434_s29 = scalar_lea.hbm %s5477_s8, 1024 }
  0x7d   : > { %p4435_p2 = scmp.lt.u32.totalorder %s5005_s22, %s5477_s8  ;;  %p4436_p3 = scmp.lt.u32.totalorder %s4434_s29, %s4429_s26 }
  0x7e   : > { %p4432_p9 = pnand %p4430_p0, %p5539_p1  ;;  %p4438_p12 = scmp.lt.u32.totalorder %s4429_s26, %s5005_s22 }
  0x7f   : > { %p4437_p8 = por %p4436_p3, %p4435_p2 }
  0x80   : > { %p4433_p13 = pneg %p4432_p9 }
  0x81   : > { %p4439_p4 = por %p4438_p12, %p4437_p8 }
  0x83   : > { %p4440_p7 = pnand %p4439_p4, %p4433_p13 }
  0x85   : > { %4443 = shalt.err (!%p4440_p7)
}
  0x86   : > { %s4444_s18 = scalar_lea.vmem %s5008_s14, 128  ;;  %s4778_s13 = smov [#allocation13]  }
  0x87   : > { %p4445_p6 = scmp.ne.s32.totalorder %s5008_s14, %s4444_s18  ;;  %s4449_s25 = sshll.u32 %s4778_s13, 4  ;;  %s4450_s25 = int_to_ptr.vmem [resolvable:$false] %s4449_s25 }
  0x88   : > { %s4451_s27 = scalar_lea.vmem %s4450_s25, 256  ;;  %p4452_p9 = scmp.lt.s32.totalorder %s5008_s14, %s4450_s25 }
  0x89   : > { %p4447_p10 = pnand %p4445_p6, %p5539_p1  ;;  %p4453_p11 = scmp.lt.s32.totalorder %s4451_s27, %s4444_s18 }
  0x8b   : > { %p4448_p0 = pneg %p4447_p10  ;;  %p4454_p2 = por %p4453_p11, %p4452_p9 }
  0x8d   : > { %p4455_p3 = pnand %p4454_p2, %p4448_p0 }
  0x8f   : > { %4458 = shalt.err (!%p4455_p3)
}
  0x90   : > { %p5540_p13 = scmp.ne.s32.totalorder %s5531_s11, 0  ;;  %s4779_s26 = smov [#allocation7]  }
  0x91   : > { %s412_s0 = sshll.u32 %s4779_s26, 4  ;;  %s4780_s29 = smov [#allocation10]   ;;  %s413_s0 = int_to_ptr.vmem [resolvable:$true] %s412_s0 }
  0x92   : > { %3794 = dma.hbm_to_vmem [thread:$0]  (!%p5540_p13), %s5005_s22, 128, %s5008_s14, %s4952_s19  }
  0x93   : > { %s435_s10 = sshll.u32 %s4780_s29, 4  ;;  %s4459_s18 = scalar_lea.hbm %s5471_s2, 128  ;;  %s5082_s10 = int_to_ptr.vmem [resolvable:$true] %s435_s10 }
  0x94   : > { %p4460_p11 = scmp.ne.s32.totalorder %s5471_s2, %s4459_s18  ;;  %p4466_p4 = scmp.lt.u32.totalorder %s4459_s18, %s5471_s2 }
  0x96   : > { %p4462_p8 = pnand %p4460_p11, %p5018_p5 }
  0x98   : > { %p4463_p12 = pneg %p4462_p8 }
  0x9a   : > { %p4468_p7 = pnand %p4466_p4, %p4463_p12 }
  0x9c   : > { %4471 = shalt.err (!%p4468_p7)
}
  0x9d   : > { %s4472_s22 = scalar_lea.vmem %s413_s0, 128  ;;  %p4480_p9 = scmp.lt.s32.totalorder %s413_s0, %s413_s0 }
  0x9e   : > { %p4473_p6 = scmp.ne.s32.totalorder %s413_s0, %s4472_s22  ;;  %p4481_p2 = scmp.lt.s32.totalorder %s4472_s22, %s4472_s22 }
  0xa0   : > { %p4475_p10 = pnand %p4473_p6, %p5018_p5  ;;  %p4482_p3 = por %p4481_p2, %p4480_p9 }
  0xa2   : > { %p4476_p0 = pneg %p4475_p10 }
  0xa4   : > { %p4483_p13 = pnand %p4482_p3, %p4476_p0 }
  0xa6   : > { %4486 = shalt.err (!%p4483_p13)
}
  0xa7   : > { %p5541_p11 = scmp.ne.s32.totalorder %s5536_s23, 0  ;;  %s4487_s13 = scalar_lea.hbm %s5473_s4, 4096 }
  0xa8   : > { %p4488_p8 = scmp.ne.s32.totalorder %s5473_s4, %s4487_s13  ;;  %p4494_p13 = scmp.lt.u32.totalorder %s4487_s13, %s5473_s4 }
  0xa9   : > { %3778 = dma.hbm_to_vmem [thread:$0]  (!%p5541_p11), %s5471_s2, 128, %s413_s0, [#allocation6]  }
  0xaa   : > { %p4490_p12 = pnand %p4488_p8, %p5018_p5 }
  0xac   : > { %p4491_p4 = pneg %p4490_p12 }
  0xae   : > { %p4496_p7 = pnand %p4494_p13, %p4491_p4 }
  0xb0   : > { %4499 = shalt.err (!%p4496_p7)
}
  0xb1   : > { %s4500_s0 = scalar_lea.vmem %s5082_s10, 4096  ;;  %p4508_p9 = scmp.lt.s32.totalorder %s5082_s10, %s5082_s10 }
  0xb2   : > { %p4501_p6 = scmp.ne.s32.totalorder %s5082_s10, %s4500_s0  ;;  %p4509_p2 = scmp.lt.s32.totalorder %s4500_s0, %s4500_s0 }
  0xb4   : > { %p4503_p10 = pnand %p4501_p6, %p5018_p5  ;;  %p4510_p3 = por %p4509_p2, %p4508_p9 }
  0xb6   : > { %p4504_p0 = pneg %p4503_p10 }
  0xb8   : > { %p4511_p8 = pnand %p4510_p3, %p4504_p0 }
  0xba   : > { %4514 = shalt.err (!%p4511_p8)
}
  0xbb   : > { %s5542_s22 = smov 256   ;;  %s4781_s7 = smov [#allocation11]  }
  0xbc   : > { %3784 = dma.hbm_to_vmem [thread:$0]  (!%p5541_p11), %s5473_s4, 4096, %s5082_s10, [#allocation9], %s5542_s22, %s5542_s22, %s4777_s12  }
  0xbd   : > { %s451_s21 = sshll.u32 %s4781_s7, 4  ;;  %s4515_s25 = scalar_lea.hbm %s5475_s6, 1024  ;;  %s452_s21 = int_to_ptr.vmem [resolvable:$true] %s451_s21 }
  0xbe   : > { %p4516_p12 = scmp.ne.s32.totalorder %s5475_s6, %s4515_s25  ;;  %p4522_p7 = scmp.lt.u32.totalorder %s4515_s25, %s5475_s6 }
  0xc0   : > { %p4518_p4 = pnand %p4516_p12, %p5018_p5 }
  0xc2   : > { %p4519_p13 = pneg %p4518_p4 }
  0xc4   : > { %p4524_p6 = pnand %p4522_p7, %p4519_p13 }
  0xc6   : > { %4527 = shalt.err (!%p4524_p6)
}
  0xc7   : > { %s4528_s12 = scalar_lea.vmem %s452_s21, 1024  ;;  %p4536_p2 = scmp.lt.s32.totalorder %s452_s21, %s452_s21 }
  0xc8   : > { %p4529_p10 = scmp.ne.s32.totalorder %s452_s21, %s4528_s12  ;;  %p4537_p3 = scmp.lt.s32.totalorder %s4528_s12, %s4528_s12 }
  0xca   : > { %p4531_p0 = pnand %p4529_p10, %p5018_p5  ;;  %p4538_p8 = por %p4537_p3, %p4536_p2 }
  0xcc   : > { %p4532_p9 = pneg %p4531_p0 }
  0xce   : > { %p4539_p1 = pnand %p4538_p8, %p4532_p9 }
  0xd0   : > { %4542 = shalt.err (!%p4539_p1)
}
  0xd1   : > { %s4782_s10 = smov 64   ;;  %s4783_s1 = smov 4  }
  0xd2   : > { %3787 = dma.hbm_to_vmem [thread:$0]  (!%p5541_p11), %s5475_s6, 1024, %s452_s21, [#allocation12], %s4782_s10, %s4782_s10, %s4783_s1  }
  0xd3   : > { %s5543_s29 = sshll.u32 %s4771_s16, 7  ;;  %s509_s18 = scalar_lea.vmem [#allocation14], %s4949_s15 }
  0xd4   : > { %s5151_s13 = scalar_lea.hbm %s5478_s9, %s5543_s29  ;;  %s516_s25 = sshll.u32 %s509_s18, 4  ;;  %s517_s25 = int_to_ptr.vmem [resolvable:$true] %s516_s25 }
  0xd5   : > { %s4543_s27 = scalar_lea.hbm %s5151_s13, 128  ;;  %p5544_p1 = scmp.ne.s32.totalorder %s5532_s20, 0 }
  0xd6   : > { %p4544_p5 = scmp.ne.s32.totalorder %s5151_s13, %s4543_s27  ;;  %s4548_s14 = scalar_lea.hbm %s5478_s9, 1024 }
  0xd7   : > { %p4549_p11 = scmp.lt.u32.totalorder %s5151_s13, %s5478_s9  ;;  %p4550_p13 = scmp.lt.u32.totalorder %s4548_s14, %s4543_s27 }
  0xd8   : > { %p4546_p12 = pnand %p4544_p5, %p5544_p1  ;;  %p4552_p6 = scmp.lt.u32.totalorder %s4543_s27, %s5151_s13 }
  0xd9   : > { %p4551_p7 = por %p4550_p13, %p4549_p11 }
  0xda   : > { %p4547_p4 = pneg %p4546_p12 }
  0xdb   : > { %p4553_p10 = por %p4552_p6, %p4551_p7 }
  0xdd   : > { %p4554_p0 = pnand %p4553_p10, %p4547_p4 }
  0xdf   : > { %4557 = shalt.err (!%p4554_p0)
}
  0xe0   : > { %s4558_s15 = scalar_lea.vmem %s517_s25, 128  ;;  %s4784_s10 = smov [#allocation14]  }
  0xe1   : > { %p4559_p9 = scmp.ne.s32.totalorder %s517_s25, %s4558_s15  ;;  %s4563_s1 = sshll.u32 %s4784_s10, 4  ;;  %s4564_s1 = int_to_ptr.vmem [resolvable:$false] %s4563_s1 }
  0xe2   : > { %s4565_s22 = scalar_lea.vmem %s4564_s1, 256  ;;  %p4566_p8 = scmp.lt.s32.totalorder %s517_s25, %s4564_s1 }
  0xe3   : > { %p4561_p2 = pnand %p4559_p9, %p5544_p1  ;;  %p4567_p5 = scmp.lt.s32.totalorder %s4565_s22, %s4558_s15 }
  0xe5   : > { %p4562_p3 = pneg %p4561_p2  ;;  %p4568_p12 = por %p4567_p5, %p4566_p8 }
  0xe7   : > { %p4569_p11 = pnand %p4568_p12, %p4562_p3 }
  0xe9   : > { %4572 = shalt.err (!%p4569_p11)
}
  0xea   : > { %p5545_p13 = scmp.ne.s32.totalorder %s5531_s11, 0  ;;  %p5546_p4 = scmp.ne.s32.totalorder %s5534_s28, 0 }
  0xeb   : > { %s527_s20 = sand.u32 (!%p5546_p4), 1, %s4890_s17   ;;  %s5176_s26 = sand.u32 (!%p5546_p4), 1, %s4763_s30  }
  0xec   : > { %3797 = dma.hbm_to_vmem [thread:$0]  (!%p5545_p13), %s5151_s13, 128, %s517_s25, %s4952_s19  }
  0xed   : > { %525 = sbr.rel (%p5546_p4) target bundleno = 1649 (0x671), region = 60  ;;  %s3370_s29 = sshll.u32 (!%p5546_p4), %s5176_s26, 5 }
  0xee   : > { %s528_s5 = scalar_lea.sflag (!%p5546_p4), [#allocation3], %s527_s20  ;;  %s5181_s7 = scalar_lea.vmem (!%p5546_p4), [#allocation2], %s3370_s29 }
  0xef   : > { %p5547_p1 = scmp.ne.s32.totalorder (!%p5546_p4), %s5525_s24, 0 }
  0xf4   : > { %4726 = dma.done.wait (%p5547_p1), %s528_s5, 512  }
  0xf5   : > { %4728 = vsyncadd (%p5547_p1), %s528_s5, 4294966784  ;;  %p5548_p7 = scmp.eq.s32.totalorder %s4890_s17, 0 }
  0xf7   : > { %4730 = dma.done.wait (%p5548_p7), [#allocation6], 256   ;;  %p5549_p6 = pmov %p5548_p7 }
  0xf9   : > { %4732 = vsyncadd (%p5549_p6), [#allocation6], 4294967040  ;;  %p5550_p10 = pmov %p5549_p6 }
  0xfa   : > { %p5551_p0 = pmov %p5549_p6 }
  0xfb   : > { %4734 = dma.done.wait (%p5550_p10), [#allocation9], 36864  }
  0xfc   : > { %4736 = vsyncadd (%p5551_p0), [#allocation9], 4294930432  ;;  %p5552_p9 = pmov %p5551_p0 }
  0xfd   : > { %p5553_p2 = pmov %p5551_p0 }
  0xfe   : > { %4738 = dma.done.wait (%p5552_p9), [#allocation12], 1024  }
  0xff   : > { %4740 = vsyncadd (%p5553_p2), [#allocation12], 4294966272  ;;  %s5200_s11 = sshll.u32 %s5176_s26, 3 }
 0x100   : > { %s560_s19 = scalar_lea.vmem [#allocation13], %s5200_s11 }
 0x101   : > { %4742 = dma.done.wait (%p5547_p1), %s528_s5, 256  }
 0x102   : > { %4744 = vsyncadd (%p5547_p1), %s528_s5, 4294967040  ;;  %s569_s28 = scalar_lea.vmem [#allocation14], %s5200_s11  ;;  %s615_s13 = scalar_lea.vmem [#allocation15], %s5200_s11 }
 0x103   : > { %s622_s18 = scalar_lea.vmem [#allocation16], %s5200_s11  ;;  %s629_s25 = scalar_lea.vmem [#allocation18], %s5200_s11 }
 0x104   : > { %p5554_p3 = scmp.ne.s32.totalorder %s4890_s17, 0 }
 0x105   : > { %v639_v0 = vld [vmem:[#allocation5] sm:$0xff] (!%p5554_p3)  ;;  %v641_v1 = vld [vmem:[#allocation7] sm:$0xff] (!%p5554_p3) }
 0x106   : > { %638 = sbr.rel (%p5554_p3) target bundleno = 269 (0x10d), region = 96  ;;  %640 = vst [vmem:[#allocation19] sm:$0xff] (!%p5554_p3), %v639_v0  ;;  %642 = vst [vmem:[#allocation21] sm:$0xff] (!%p5554_p3), %v641_v1 }
 0x10d PF: > { %v3873_v2 = vld [vmem:[#allocation10 + $0x4] ss:$16 sps:$4 sm:$0xff]   ;;  %v3875_v3 = vld [vmem:[#allocation10 + $0xc] ss:$16 sps:$4 sm:$0xff]   ;;  %v4785_v4 = vmov 0   ;;  %vm4787_vm0 = vmmov 0  }
 0x10e   : > { %1130 = vmatprep.mubr.bf16.mxu0 %v4785_v4  ;;  %1171 = vmatprep.mubr.bf16.mxu1 %v4785_v4  ;;  %v3877_v5 = vld [vmem:[#allocation10] ss:$16 sps:$4 sm:$0xff]   ;;  %v3878_v6 = vld [vmem:[#allocation10 + $0x8] ss:$16 sps:$4 sm:$0xff]   ;;  %v3879_v7 = vld [vmem:[#allocation10 + $0x24] ss:$16 sps:$4 sm:$0xff]  }
 0x10f   : > { %1098 = vmatprep.subr.bf16.mxu0 %v3873_v2  ;;  %1139 = vmatprep.subr.bf16.mxu1 %v3875_v3  ;;  %v3881_v8 = vld [vmem:[#allocation10 + $0x2c] ss:$16 sps:$4 sm:$0xff]   ;;  %v3883_v9 = vld [vmem:[#allocation10 + $0x20] ss:$16 sps:$4 sm:$0xff]   ;;  %v3884_v10 = vld [vmem:[#allocation10 + $0x28] ss:$16 sps:$4 sm:$0xff]  }
 0x110   : > { %1099 = vmatpush1.bf16.msra.mxu0 %v3877_v5  ;;  %1140 = vmatpush1.bf16.msra.mxu1 %v3878_v6  ;;  %v3885_v11 = vld [vmem:[#allocation10 + $0x44] ss:$16 sps:$4 sm:$0xff]   ;;  %v3887_v12 = vld [vmem:[#allocation10 + $0x4c] ss:$16 sps:$4 sm:$0xff]   ;;  %v3889_v13 = vld [vmem:[#allocation10 + $0x40] ss:$16 sps:$4 sm:$0xff]  }
 0x111   : > { %1100 = vmatprep.subr.bf16.mxu0 %v3879_v7  ;;  %1141 = vmatprep.subr.bf16.mxu1 %v3881_v8  ;;  %v3890_v14 = vld [vmem:[#allocation10 + $0x48] ss:$16 sps:$4 sm:$0xff]   ;;  %v3891_v15 = vld [vmem:[#allocation10 + $0x64] ss:$16 sps:$4 sm:$0xff]   ;;  %v3893_v16 = vld [vmem:[#allocation10 + $0x6c] ss:$16 sps:$4 sm:$0xff]  }
 0x112   : > { %v3895_v17 = vld [vmem:[#allocation10 + $0x60] ss:$16 sps:$4 sm:$0xff]   ;;  %v3896_v18 = vld [vmem:[#allocation10 + $0x68] ss:$16 sps:$4 sm:$0xff]   ;;  %v3897_v19 = vld [vmem:[#allocation10 + $0x84] ss:$16 sps:$4 sm:$0xff]  }
 0x113   : > { %v3899_v20 = vld [vmem:[#allocation10 + $0x8c] ss:$16 sps:$4 sm:$0xff]   ;;  %v3901_v21 = vld [vmem:[#allocation10 + $0x80] ss:$16 sps:$4 sm:$0xff]   ;;  %v3902_v22 = vld [vmem:[#allocation10 + $0x88] ss:$16 sps:$4 sm:$0xff]  }
 0x114   : > { %1101 = vmatpush1.bf16.msra.mxu0 %v3883_v9  ;;  %1142 = vmatpush1.bf16.msra.mxu1 %v3884_v10  ;;  %v3903_v23 = vld [vmem:[#allocation10 + $0xa4] ss:$16 sps:$4 sm:$0xff]   ;;  %v3905_v24 = vld [vmem:[#allocation10 + $0xac] ss:$16 sps:$4 sm:$0xff]   ;;  %v3907_v25 = vld [vmem:[#allocation10 + $0xa0] ss:$16 sps:$4 sm:$0xff]  }
 0x115   : > { %1102 = vmatprep.subr.bf16.mxu0 %v3885_v11  ;;  %1143 = vmatprep.subr.bf16.mxu1 %v3887_v12  ;;  %v3908_v26 = vld [vmem:[#allocation10 + $0xa8] ss:$16 sps:$4 sm:$0xff]   ;;  %v3909_v27 = vld [vmem:[#allocation10 + $0xc4] ss:$16 sps:$4 sm:$0xff]   ;;  %v3911_v28 = vld [vmem:[#allocation10 + $0xcc] ss:$16 sps:$4 sm:$0xff]  }
 0x116   : > { %v3913_v29 = vld [vmem:[#allocation10 + $0xc0] ss:$16 sps:$4 sm:$0xff]   ;;  %v3914_v30 = vld [vmem:[#allocation10 + $0xc8] ss:$16 sps:$4 sm:$0xff]   ;;  %v3915_v31 = vld [vmem:[#allocation10 + $0xe4] ss:$16 sps:$4 sm:$0xff]  }
 0x117   : > { %v3917_v32 = vld [vmem:[#allocation10 + $0xec] ss:$16 sps:$4 sm:$0xff]   ;;  %v3919_v33 = vld [vmem:[#allocation10 + $0xe0] ss:$16 sps:$4 sm:$0xff]   ;;  %v3920_v34 = vld [vmem:[#allocation10 + $0xe8] ss:$16 sps:$4 sm:$0xff]  }
 0x118   : > { %1103 = vmatpush1.bf16.msra.mxu0 %v3889_v13  ;;  %1144 = vmatpush1.bf16.msra.mxu1 %v3890_v14  ;;  %v643_v35 = vld [vmem:[#allocation19] sm:$0xff]  ;;  %v5217_v11 = vld [vmem:[%s5181_s7 + $0x8] sm:$0xff]  ;;  %s5555_s23 = sld [smem:[#allocation38_spill]]  ;;  %s5556_s0 = sld [smem:[#allocation39_spill]] }
 0x119   : > { %1104 = vmatprep.subr.bf16.mxu0 %v3891_v15  ;;  %1145 = vmatprep.subr.bf16.mxu1 %v3893_v16  ;;  %v3923_v36 = vld [vmem:[#allocation8 + $0x4] ss:$16 sps:$4 sm:$0xff]   ;;  %v905_v38 = vpack.c.bf16 %v643_v35, %v643_v35  ;;  %v3921_v39 = vld [vmem:[#allocation8] ss:$16 sps:$4 sm:$0xff]   ;;  %v5225_v14 = vcombine.high %v5217_v11, %v5217_v11  ;;  %s5309_s12 = sshll.u32 %s4890_s17, 7  ;;  %s4789_s15 = smov [#allocation19]  }
 0x11a   : > { %v3926_v37 = vld [vmem:[#allocation8 + $0x204] ss:$16 sps:$4 sm:$0xff]   ;;  %v3924_v40 = vld [vmem:[#allocation8 + $0x200] ss:$16 sps:$4 sm:$0xff]   ;;  %s3103_s10 = sshll.u32 %s4789_s15, 4  ;;  %p5557_p5 = scmp.eq.s32.totalorder %s4890_s17, 7  ;;  %s3104_s10 = int_to_ptr.vmem [resolvable:$true] %s3103_s10 }
 0x11b   : > { %v3929_v41 = vld [vmem:[#allocation8 + $0x24] ss:$16 sps:$4 sm:$0xff]   ;;  %v3927_v43 = vld [vmem:[#allocation8 + $0x20] ss:$16 sps:$4 sm:$0xff]   ;;  %s4573_s1 = scalar_lea.vmem %s3104_s10, 128  ;;  %p4580_p13 = scmp.lt.s32.totalorder %s3104_s10, %s3104_s10 }
 0x11c   : > { %1105 = vmatpush1.bf16.msra.mxu0 %v3895_v17  ;;  %1146 = vmatpush1.bf16.msra.mxu1 %v3896_v18  ;;  %v3932_v42 = vld [vmem:[#allocation8 + $0x224] ss:$16 sps:$4 sm:$0xff]   ;;  %v3930_v44 = vld [vmem:[#allocation8 + $0x220] ss:$16 sps:$4 sm:$0xff]   ;;  %p4574_p8 = scmp.ne.s32.totalorder %s3104_s10, %s4573_s1  ;;  %p4581_p4 = scmp.lt.s32.totalorder %s4573_s1, %s4573_s1 }
 0x11d   : > { %1106 = vmatprep.subr.bf16.mxu0 %v3897_v19  ;;  %1147 = vmatprep.subr.bf16.mxu1 %v3899_v20  ;;  %v3935_v45 = vld [vmem:[#allocation8 + $0x44] ss:$16 sps:$4 sm:$0xff]   ;;  %v3933_v47 = vld [vmem:[#allocation8 + $0x40] ss:$16 sps:$4 sm:$0xff]  }
 0x11e   : > { %v3938_v46 = vld [vmem:[#allocation8 + $0x244] ss:$16 sps:$4 sm:$0xff]   ;;  %v3936_v48 = vld [vmem:[#allocation8 + $0x240] ss:$16 sps:$4 sm:$0xff]   ;;  %p4575_p12 = pnand %p4574_p8, %p5557_p5  ;;  %p4582_p1 = por %p4581_p4, %p4580_p13 }
 0x11f   : > { %v3941_v49 = vld [vmem:[#allocation8 + $0x64] ss:$16 sps:$4 sm:$0xff]   ;;  %v3939_v51 = vld [vmem:[#allocation8 + $0x60] ss:$16 sps:$4 sm:$0xff]  }
 0x120   : > { %1107 = vmatpush1.bf16.msra.mxu0 %v3901_v21  ;;  %1148 = vmatpush1.bf16.msra.mxu1 %v3902_v22  ;;  %v3944_v50 = vld [vmem:[#allocation8 + $0x264] ss:$16 sps:$4 sm:$0xff]   ;;  %v3942_v52 = vld [vmem:[#allocation8 + $0x260] ss:$16 sps:$4 sm:$0xff]   ;;  %p4576_p11 = pneg %p4575_p12 }
 0x121   : > { %1108 = vmatprep.subr.bf16.mxu0 %v3903_v23  ;;  %1149 = vmatprep.subr.bf16.mxu1 %v3905_v24  ;;  %v3947_v53 = vld [vmem:[#allocation8 + $0x84] ss:$16 sps:$4 sm:$0xff]   ;;  %v3945_v55 = vld [vmem:[#allocation8 + $0x80] ss:$16 sps:$4 sm:$0xff]  }
 0x122   : > { %v3950_v54 = vld [vmem:[#allocation8 + $0x284] ss:$16 sps:$4 sm:$0xff]   ;;  %v3948_v56 = vld [vmem:[#allocation8 + $0x280] ss:$16 sps:$4 sm:$0xff]   ;;  %p4583_p7 = pnand %p4582_p1, %p4576_p11 }
 0x123   : > { %v3953_v57 = vld [vmem:[#allocation8 + $0xa4] ss:$16 sps:$4 sm:$0xff]   ;;  %v3951_v59 = vld [vmem:[#allocation8 + $0xa0] ss:$16 sps:$4 sm:$0xff]  }
 0x124   : > { %1109 = vmatpush1.bf16.msra.mxu0 %v3907_v25  ;;  %1150 = vmatpush1.bf16.msra.mxu1 %v3908_v26  ;;  %v3956_v58 = vld [vmem:[#allocation8 + $0x2a4] ss:$16 sps:$4 sm:$0xff]   ;;  %v3954_v60 = vld [vmem:[#allocation8 + $0x2a0] ss:$16 sps:$4 sm:$0xff]  }
 0x125   : > { %1110 = vmatprep.subr.bf16.mxu0 %v3909_v27  ;;  %1151 = vmatprep.subr.bf16.mxu1 %v3911_v28  ;;  %v3959_v61 = vld [vmem:[#allocation8 + $0xc4] ss:$16 sps:$4 sm:$0xff]   ;;  %v3957_v63 = vld [vmem:[#allocation8 + $0xc0] ss:$16 sps:$4 sm:$0xff]  }
 0x126   : > { %v3962_v62 = vld [vmem:[#allocation8 + $0x2c4] ss:$16 sps:$4 sm:$0xff]   ;;  %v3960_v0 = vld [vmem:[#allocation8 + $0x2c0] ss:$16 sps:$4 sm:$0xff]  }
 0x127   : > { %v3965_v1 = vld [vmem:[#allocation8 + $0xe4] ss:$16 sps:$4 sm:$0xff]   ;;  %v3963_v3 = vld [vmem:[#allocation8 + $0xe0] ss:$16 sps:$4 sm:$0xff]  }
 0x128   : > { %1111 = vmatpush1.bf16.msra.mxu0 %v3913_v29  ;;  %1152 = vmatpush1.bf16.msra.mxu1 %v3914_v30  ;;  %v3968_v2 = vld [vmem:[#allocation8 + $0x2e4] ss:$16 sps:$4 sm:$0xff]   ;;  %v3966_v4 = vld [vmem:[#allocation8 + $0x2e0] ss:$16 sps:$4 sm:$0xff]  }
 0x129   : > { %1112 = vmatprep.subr.bf16.mxu0 %v3915_v31  ;;  %1153 = vmatprep.subr.bf16.mxu1 %v3917_v32  ;;  %v3971_v5 = vld [vmem:[#allocation8 + $0x104] ss:$16 sps:$4 sm:$0xff]   ;;  %v3969_v7 = vld [vmem:[#allocation8 + $0x100] ss:$16 sps:$4 sm:$0xff]  }
 0x12a   : > { %v3974_v6 = vld [vmem:[#allocation8 + $0x304] ss:$16 sps:$4 sm:$0xff]   ;;  %v3972_v8 = vld [vmem:[#allocation8 + $0x300] ss:$16 sps:$4 sm:$0xff]  }
 0x12b   : > { %v3977_v9 = vld [vmem:[#allocation8 + $0x124] ss:$16 sps:$4 sm:$0xff]   ;;  %v3975_v15 = vld [vmem:[#allocation8 + $0x120] ss:$16 sps:$4 sm:$0xff]  }
 0x12c   : > { %1113 = vmatpush1.bf16.msra.mxu0 %v3919_v33  ;;  %1154 = vmatpush1.bf16.msra.mxu1 %v3920_v34  ;;  %v5214_v10 = vld [vmem:[%s5181_s7] sm:$0xff] }
 0x12d   : > { %2488 = vmatprep.subr.bf16.mxu0 %v3923_v36  ;;  %2529 = vmatprep.subr.bf16.mxu1 %v3926_v37  ;;  %v3980_v12 = vld [vmem:[#allocation8 + $0x324] ss:$16 sps:$4 sm:$0xff]   ;;  %v5221_v13 = vcombine.high %v5214_v10, %v5214_v10  ;;  %v3978_v16 = vld [vmem:[#allocation8 + $0x320] ss:$16 sps:$4 sm:$0xff]  }
 0x12e   : > { %v3983_v17 = vld [vmem:[#allocation8 + $0x144] ss:$16 sps:$4 sm:$0xff]   ;;  %v3981_v19 = vld [vmem:[#allocation8 + $0x140] ss:$16 sps:$4 sm:$0xff]  }
 0x12f   : > { %1131 = vmatmul.mubr.bf16.vlgmr.msra.gmra.mrb[0].mxu0 %v905_v38  ;;  %1172 = vmatmul.mubr.bf16.vlgmr.msra.gmra.mrb[0].mxu1 %v905_v38  ;;  %v3986_v18 = vld [vmem:[#allocation8 + $0x344] ss:$16 sps:$4 sm:$0xff]   ;;  %v3984_v20 = vld [vmem:[#allocation8 + $0x340] ss:$16 sps:$4 sm:$0xff]  }
 0x130   : > { %2489 = vmatpush1.bf16.msra.mxu0 %v3921_v39  ;;  %2530 = vmatpush1.bf16.msra.mxu1 %v3924_v40  ;;  %v3989_v21 = vld [vmem:[#allocation8 + $0x164] ss:$16 sps:$4 sm:$0xff]   ;;  %v3987_v23 = vld [vmem:[#allocation8 + $0x160] ss:$16 sps:$4 sm:$0xff]  }
 0x131   : > { %2490 = vmatprep.subr.bf16.mxu0 %v3929_v41  ;;  %2531 = vmatprep.subr.bf16.mxu1 %v3932_v42  ;;  %v3992_v22 = vld [vmem:[#allocation8 + $0x364] ss:$16 sps:$4 sm:$0xff]   ;;  %v3990_v24 = vld [vmem:[#allocation8 + $0x360] ss:$16 sps:$4 sm:$0xff]  }
 0x132   : > { %2520 = vmatprep.mubr.bf16.mxu0 %v5221_v13  ;;  %2561 = vmatprep.mubr.bf16.mxu1 %v5225_v14  ;;  %v3995_v25 = vld [vmem:[#allocation8 + $0x184] ss:$16 sps:$4 sm:$0xff]   ;;  %v3993_v27 = vld [vmem:[#allocation8 + $0x180] ss:$16 sps:$4 sm:$0xff]  }
 0x133   : > { %v3998_v26 = vld [vmem:[#allocation8 + $0x384] ss:$16 sps:$4 sm:$0xff]   ;;  %v3996_v28 = vld [vmem:[#allocation8 + $0x380] ss:$16 sps:$4 sm:$0xff]  }
 0x134   : > { %2491 = vmatpush1.bf16.msra.mxu0 %v3927_v43  ;;  %2532 = vmatpush1.bf16.msra.mxu1 %v3930_v44  ;;  %v4001_v29 = vld [vmem:[#allocation8 + $0x1a4] ss:$16 sps:$4 sm:$0xff]   ;;  %v3999_v31 = vld [vmem:[#allocation8 + $0x1a0] ss:$16 sps:$4 sm:$0xff]   ;;  %v5231_v43 = vcombine.low %v5214_v10, %v5214_v10  ;;  %v5235_v44 = vcombine.low %v5217_v11, %v5217_v11 }
 0x135   : > { %2492 = vmatprep.subr.bf16.mxu0 %v3935_v45  ;;  %2533 = vmatprep.subr.bf16.mxu1 %v3938_v46  ;;  %v4004_v30 = vld [vmem:[#allocation8 + $0x3a4] ss:$16 sps:$4 sm:$0xff]   ;;  %v4002_v32 = vld [vmem:[#allocation8 + $0x3a0] ss:$16 sps:$4 sm:$0xff]  }
 0x136   : > { %v4007_v33 = vld [vmem:[#allocation8 + $0x1c4] ss:$16 sps:$4 sm:$0xff]   ;;  %v4005_v35 = vld [vmem:[#allocation8 + $0x1c0] ss:$16 sps:$4 sm:$0xff]  }
 0x137   : > { %v4010_v34 = vld [vmem:[#allocation8 + $0x3c4] ss:$16 sps:$4 sm:$0xff]   ;;  %v4008_v36 = vld [vmem:[#allocation8 + $0x3c0] ss:$16 sps:$4 sm:$0xff]  }
 0x138   : > { %2493 = vmatpush1.bf16.msra.mxu0 %v3933_v47  ;;  %2534 = vmatpush1.bf16.msra.mxu1 %v3936_v48  ;;  %v4013_v37 = vld [vmem:[#allocation8 + $0x1e4] ss:$16 sps:$4 sm:$0xff]   ;;  %v4011_v39 = vld [vmem:[#allocation8 + $0x1e0] ss:$16 sps:$4 sm:$0xff]  }
 0x139   : > { %2494 = vmatprep.subr.bf16.mxu0 %v3941_v49  ;;  %2535 = vmatprep.subr.bf16.mxu1 %v3944_v50  ;;  %v4016_v38 = vld [vmem:[#allocation8 + $0x3e4] ss:$16 sps:$4 sm:$0xff]   ;;  %v4014_v40 = vld [vmem:[#allocation8 + $0x3e0] ss:$16 sps:$4 sm:$0xff]  }
 0x13a   : > { %v4023_v41 = vld [vmem:[#allocation8 + $0x404] ss:$16 sps:$4 sm:$0xff]   ;;  %v4021_v45 = vld [vmem:[#allocation8 + $0x400] ss:$16 sps:$4 sm:$0xff]  }
 0x13b   : > { %v4026_v42 = vld [vmem:[#allocation8 + $0x604] ss:$16 sps:$4 sm:$0xff]   ;;  %v4024_v46 = vld [vmem:[#allocation8 + $0x600] ss:$16 sps:$4 sm:$0xff]  }
 0x13c   : > { %2495 = vmatpush1.bf16.msra.mxu0 %v3939_v51  ;;  %2536 = vmatpush1.bf16.msra.mxu1 %v3942_v52  ;;  %v4029_v47 = vld [vmem:[#allocation8 + $0x424] ss:$16 sps:$4 sm:$0xff]   ;;  %v4027_v49 = vld [vmem:[#allocation8 + $0x420] ss:$16 sps:$4 sm:$0xff]  }
 0x13d   : > { %2496 = vmatprep.subr.bf16.mxu0 %v3947_v53  ;;  %2537 = vmatprep.subr.bf16.mxu1 %v3950_v54  ;;  %v4032_v48 = vld [vmem:[#allocation8 + $0x624] ss:$16 sps:$4 sm:$0xff]   ;;  %v4030_v50 = vld [vmem:[#allocation8 + $0x620] ss:$16 sps:$4 sm:$0xff]  }
 0x13e   : > { %v4035_v51 = vld [vmem:[#allocation8 + $0x444] ss:$16 sps:$4 sm:$0xff]   ;;  %v4033_v53 = vld [vmem:[#allocation8 + $0x440] ss:$16 sps:$4 sm:$0xff]  }
 0x13f   : > { %v4038_v52 = vld [vmem:[#allocation8 + $0x644] ss:$16 sps:$4 sm:$0xff]   ;;  %v4036_v54 = vld [vmem:[#allocation8 + $0x640] ss:$16 sps:$4 sm:$0xff]  }
 0x140   : > { %2497 = vmatpush1.bf16.msra.mxu0 %v3945_v55  ;;  %2538 = vmatpush1.bf16.msra.mxu1 %v3948_v56  ;;  %v4041_v55 = vld [vmem:[#allocation8 + $0x464] ss:$16 sps:$4 sm:$0xff]   ;;  %v4060_v10 = vld [vmem:[#allocation8 + $0x6c0] ss:$16 sps:$4 sm:$0xff]  }
 0x141   : > { %2498 = vmatprep.subr.bf16.mxu0 %v3953_v57  ;;  %2539 = vmatprep.subr.bf16.mxu1 %v3956_v58  ;;  %v4044_v56 = vld [vmem:[#allocation8 + $0x664] ss:$16 sps:$4 sm:$0xff]   ;;  %v4039_v57 = vld [vmem:[#allocation8 + $0x460] ss:$16 sps:$4 sm:$0xff]  }
 0x142   : > { %v4042_v58 = vld [vmem:[#allocation8 + $0x660] ss:$16 sps:$4 sm:$0xff]   ;;  %v4065_v11 = vld [vmem:[#allocation8 + $0x4e4] ss:$16 sps:$4 sm:$0xff]  }
 0x144   : > { %2499 = vmatpush1.bf16.msra.mxu0 %v3951_v59  ;;  %2540 = vmatpush1.bf16.msra.mxu1 %v3954_v60  ;;  %v5240_v59 = vld [vmem:[%s5181_s7 + $0x10] sm:$0xff] }
 0x145   : > { %2500 = vmatprep.subr.bf16.mxu0 %v3959_v61  ;;  %2541 = vmatprep.subr.bf16.mxu1 %v3962_v62  ;;  %v5244_v60 = vcombine.high %v5240_v59, %v5240_v59  ;;  %v5247_v61 = vld [vmem:[%s5181_s7 + $0x18] sm:$0xff]  ;;  %v4047_v62 = vld [vmem:[#allocation8 + $0x484] ss:$16 sps:$4 sm:$0xff]  }
 0x148   : > { %2501 = vmatpush1.bf16.msra.mxu0 %v3957_v63  ;;  %2542 = vmatpush1.bf16.msra.mxu1 %v3960_v0  ;;  %v4050_v63 = vld [vmem:[#allocation8 + $0x684] ss:$16 sps:$4 sm:$0xff]   ;;  %v5251_v0 = vcombine.high %v5247_v61, %v5247_v61 }
 0x149   : > { %2502 = vmatprep.subr.bf16.mxu0 %v3965_v1  ;;  %2543 = vmatprep.subr.bf16.mxu1 %v3968_v2  ;;  %v4045_v1 = vld [vmem:[#allocation8 + $0x480] ss:$16 sps:$4 sm:$0xff]  }
 0x14a   : > { %v4048_v2 = vld [vmem:[#allocation8 + $0x680] ss:$16 sps:$4 sm:$0xff]  }
 0x14c   : > { %2503 = vmatpush1.bf16.msra.mxu0 %v3963_v3  ;;  %2544 = vmatpush1.bf16.msra.mxu1 %v3966_v4  ;;  %v4053_v3 = vld [vmem:[#allocation8 + $0x4a4] ss:$16 sps:$4 sm:$0xff]  }
 0x14d   : > { %2504 = vmatprep.subr.bf16.mxu0 %v3971_v5  ;;  %2545 = vmatprep.subr.bf16.mxu1 %v3974_v6  ;;  %v4056_v4 = vld [vmem:[#allocation8 + $0x6a4] ss:$16 sps:$4 sm:$0xff]   ;;  %v4051_v5 = vld [vmem:[#allocation8 + $0x4a0] ss:$16 sps:$4 sm:$0xff]  }
 0x14e   : > { %v4054_v6 = vld [vmem:[#allocation8 + $0x6a0] ss:$16 sps:$4 sm:$0xff]  }
 0x150   : > { %2505 = vmatpush1.bf16.msra.mxu0 %v3969_v7  ;;  %2546 = vmatpush1.bf16.msra.mxu1 %v3972_v8  ;;  %v4059_v7 = vld [vmem:[#allocation8 + $0x4c4] ss:$16 sps:$4 sm:$0xff]  }
 0x151   : > { %2506 = vmatprep.subr.bf16.mxu0 %v3977_v9  ;;  %2547 = vmatprep.subr.bf16.mxu1 %v3980_v12  ;;  %v4062_v8 = vld [vmem:[#allocation8 + $0x6c4] ss:$16 sps:$4 sm:$0xff]   ;;  %v4057_v9 = vld [vmem:[#allocation8 + $0x4c0] ss:$16 sps:$4 sm:$0xff]  }
 0x152   : > { %v4068_v12 = vld [vmem:[#allocation8 + $0x6e4] ss:$16 sps:$4 sm:$0xff]  }
 0x154   : > { %2507 = vmatpush1.bf16.msra.mxu0 %v3975_v15  ;;  %2548 = vmatpush1.bf16.msra.mxu1 %v3978_v16  ;;  %v4063_v15 = vld [vmem:[#allocation8 + $0x4e0] ss:$16 sps:$4 sm:$0xff]  }
 0x155   : > { %2508 = vmatprep.subr.bf16.mxu0 %v3983_v17  ;;  %2549 = vmatprep.subr.bf16.mxu1 %v3986_v18  ;;  %v4066_v16 = vld [vmem:[#allocation8 + $0x6e0] ss:$16 sps:$4 sm:$0xff]   ;;  %v4071_v17 = vld [vmem:[#allocation8 + $0x504] ss:$16 sps:$4 sm:$0xff]  }
 0x156   : > { %v4074_v18 = vld [vmem:[#allocation8 + $0x704] ss:$16 sps:$4 sm:$0xff]  }
 0x158   : > { %2509 = vmatpush1.bf16.msra.mxu0 %v3981_v19  ;;  %2550 = vmatpush1.bf16.msra.mxu1 %v3984_v20  ;;  %v4069_v19 = vld [vmem:[#allocation8 + $0x500] ss:$16 sps:$4 sm:$0xff]  }
 0x159   : > { %2510 = vmatprep.subr.bf16.mxu0 %v3989_v21  ;;  %2551 = vmatprep.subr.bf16.mxu1 %v3992_v22  ;;  %v4072_v20 = vld [vmem:[#allocation8 + $0x700] ss:$16 sps:$4 sm:$0xff]   ;;  %v4077_v21 = vld [vmem:[#allocation8 + $0x524] ss:$16 sps:$4 sm:$0xff]  }
 0x15a   : > { %v4080_v22 = vld [vmem:[#allocation8 + $0x724] ss:$16 sps:$4 sm:$0xff]  }
 0x15c   : > { %2511 = vmatpush1.bf16.msra.mxu0 %v3987_v23  ;;  %2552 = vmatpush1.bf16.msra.mxu1 %v3990_v24  ;;  %v4075_v23 = vld [vmem:[#allocation8 + $0x520] ss:$16 sps:$4 sm:$0xff]  }
 0x15d   : > { %2512 = vmatprep.subr.bf16.mxu0 %v3995_v25  ;;  %2553 = vmatprep.subr.bf16.mxu1 %v3998_v26  ;;  %v4078_v24 = vld [vmem:[#allocation8 + $0x720] ss:$16 sps:$4 sm:$0xff]   ;;  %v4083_v25 = vld [vmem:[#allocation8 + $0x544] ss:$16 sps:$4 sm:$0xff]  }
 0x15e   : > { %v4086_v26 = vld [vmem:[#allocation8 + $0x744] ss:$16 sps:$4 sm:$0xff]  }
 0x160   : > { %2513 = vmatpush1.bf16.msra.mxu0 %v3993_v27  ;;  %2554 = vmatpush1.bf16.msra.mxu1 %v3996_v28  ;;  %v4081_v27 = vld [vmem:[#allocation8 + $0x540] ss:$16 sps:$4 sm:$0xff]  }
 0x161   : > { %2514 = vmatprep.subr.bf16.mxu0 %v4001_v29  ;;  %2555 = vmatprep.subr.bf16.mxu1 %v4004_v30  ;;  %v4084_v28 = vld [vmem:[#allocation8 + $0x740] ss:$16 sps:$4 sm:$0xff]   ;;  %v4089_v29 = vld [vmem:[#allocation8 + $0x564] ss:$16 sps:$4 sm:$0xff]  }
 0x162   : > { %v4092_v30 = vld [vmem:[#allocation8 + $0x764] ss:$16 sps:$4 sm:$0xff]  }
 0x164   : > { %2515 = vmatpush1.bf16.msra.mxu0 %v3999_v31  ;;  %2556 = vmatpush1.bf16.msra.mxu1 %v4002_v32  ;;  %v4087_v31 = vld [vmem:[#allocation8 + $0x560] ss:$16 sps:$4 sm:$0xff]  }
 0x165   : > { %2516 = vmatprep.subr.bf16.mxu0 %v4007_v33  ;;  %2557 = vmatprep.subr.bf16.mxu1 %v4010_v34  ;;  %v4090_v32 = vld [vmem:[#allocation8 + $0x760] ss:$16 sps:$4 sm:$0xff]   ;;  %v4095_v33 = vld [vmem:[#allocation8 + $0x584] ss:$16 sps:$4 sm:$0xff]  }
 0x166   : > { %v4098_v34 = vld [vmem:[#allocation8 + $0x784] ss:$16 sps:$4 sm:$0xff]  }
 0x168   : > { %2517 = vmatpush1.bf16.msra.mxu0 %v4005_v35  ;;  %2558 = vmatpush1.bf16.msra.mxu1 %v4008_v36  ;;  %v4093_v35 = vld [vmem:[#allocation8 + $0x580] ss:$16 sps:$4 sm:$0xff]  }
 0x169   : > { %2518 = vmatprep.subr.bf16.mxu0 %v4013_v37  ;;  %2559 = vmatprep.subr.bf16.mxu1 %v4016_v38  ;;  %v4096_v36 = vld [vmem:[#allocation8 + $0x780] ss:$16 sps:$4 sm:$0xff]   ;;  %v4101_v37 = vld [vmem:[#allocation8 + $0x5a4] ss:$16 sps:$4 sm:$0xff]  }
 0x16a   : > { %v4104_v38 = vld [vmem:[#allocation8 + $0x7a4] ss:$16 sps:$4 sm:$0xff]  }
 0x16c   : > { %2519 = vmatpush1.bf16.msra.mxu0 %v4011_v39  ;;  %2560 = vmatpush1.bf16.msra.mxu1 %v4014_v40  ;;  %v4099_v39 = vld [vmem:[#allocation8 + $0x5a0] ss:$16 sps:$4 sm:$0xff]  }
 0x16d   : > { %2570 = vmatprep.subr.bf16.mxu0 %v4023_v41  ;;  %2611 = vmatprep.subr.bf16.mxu1 %v4026_v42  ;;  %v4102_v40 = vld [vmem:[#allocation8 + $0x7a0] ss:$16 sps:$4 sm:$0xff]   ;;  %v4107_v41 = vld [vmem:[#allocation8 + $0x5c4] ss:$16 sps:$4 sm:$0xff]  }
 0x16e   : > { %v4110_v42 = vld [vmem:[#allocation8 + $0x7c4] ss:$16 sps:$4 sm:$0xff]  }
 0x16f   : > { %2521 = vmatmul.mubr.bf16.vlgmr.msra.gmra.mrb[4].mxu0 %v5231_v43  ;;  %2562 = vmatmul.mubr.bf16.vlgmr.msra.gmra.mrb[4].mxu1 %v5235_v44 }
 0x170   : > { %2571 = vmatpush1.bf16.msra.mxu0 %v4021_v45  ;;  %2612 = vmatpush1.bf16.msra.mxu1 %v4024_v46  ;;  %v4105_v45 = vld [vmem:[#allocation8 + $0x5c0] ss:$16 sps:$4 sm:$0xff]  }
 0x171   : > { %2572 = vmatprep.subr.bf16.mxu0 %v4029_v47  ;;  %2613 = vmatprep.subr.bf16.mxu1 %v4032_v48  ;;  %v4108_v46 = vld [vmem:[#allocation8 + $0x7c0] ss:$16 sps:$4 sm:$0xff]   ;;  %v4113_v47 = vld [vmem:[#allocation8 + $0x5e4] ss:$16 sps:$4 sm:$0xff]  }
 0x172   : > { %2602 = vmatprep.mubr.bf16.mxu0 %v5244_v60  ;;  %2643 = vmatprep.mubr.bf16.mxu1 %v5251_v0  ;;  %v4116_v48 = vld [vmem:[#allocation8 + $0x7e4] ss:$16 sps:$4 sm:$0xff]  }
 0x174   : > { %2573 = vmatpush1.bf16.msra.mxu0 %v4027_v49  ;;  %2614 = vmatpush1.bf16.msra.mxu1 %v4030_v50  ;;  %v4111_v49 = vld [vmem:[#allocation8 + $0x5e0] ss:$16 sps:$4 sm:$0xff]  }
 0x175   : > { %2574 = vmatprep.subr.bf16.mxu0 %v4035_v51  ;;  %2615 = vmatprep.subr.bf16.mxu1 %v4038_v52  ;;  %v4114_v50 = vld [vmem:[#allocation8 + $0x7e0] ss:$16 sps:$4 sm:$0xff]   ;;  %v4123_v51 = vld [vmem:[#allocation8 + $0xc] ss:$16 sps:$4 sm:$0xff]  }
 0x176   : > { %v4126_v52 = vld [vmem:[#allocation8 + $0x20c] ss:$16 sps:$4 sm:$0xff]  }
 0x178   : > { %2575 = vmatpush1.bf16.msra.mxu0 %v4033_v53  ;;  %2616 = vmatpush1.bf16.msra.mxu1 %v4036_v54  ;;  %v5257_v53 = vcombine.low %v5240_v59, %v5240_v59  ;;  %v5261_v54 = vcombine.low %v5247_v61, %v5247_v61  ;;  %v4130_v59 = vld [vmem:[#allocation8 + $0x228] ss:$16 sps:$4 sm:$0xff]   ;;  %v4135_v61 = vld [vmem:[#allocation8 + $0x4c] ss:$16 sps:$4 sm:$0xff]  }
 0x179   : > { %2576 = vmatprep.subr.bf16.mxu0 %v4041_v55  ;;  %2617 = vmatprep.subr.bf16.mxu1 %v4044_v56  ;;  %v4121_v55 = vld [vmem:[#allocation8 + $0x8] ss:$16 sps:$4 sm:$0xff]  }
 0x17a   : > { %v4124_v56 = vld [vmem:[#allocation8 + $0x208] ss:$16 sps:$4 sm:$0xff]  }
 0x17c   : > { %2577 = vmatpush1.bf16.msra.mxu0 %v4039_v57  ;;  %2618 = vmatpush1.bf16.msra.mxu1 %v4042_v58  ;;  %v4129_v57 = vld [vmem:[#allocation8 + $0x2c] ss:$16 sps:$4 sm:$0xff]  }
 0x17d   : > { %2578 = vmatprep.subr.bf16.mxu0 %v4047_v62  ;;  %2619 = vmatprep.subr.bf16.mxu1 %v4050_v63  ;;  %v4132_v58 = vld [vmem:[#allocation8 + $0x22c] ss:$16 sps:$4 sm:$0xff]   ;;  %v4127_v62 = vld [vmem:[#allocation8 + $0x28] ss:$16 sps:$4 sm:$0xff]  }
 0x17e   : > { %v4138_v63 = vld [vmem:[#allocation8 + $0x24c] ss:$16 sps:$4 sm:$0xff]  }
 0x180   : > { %2579 = vmatpush1.bf16.msra.mxu0 %v4045_v1  ;;  %2620 = vmatpush1.bf16.msra.mxu1 %v4048_v2  ;;  %v4133_v1 = vld [vmem:[#allocation8 + $0x48] ss:$16 sps:$4 sm:$0xff]  }
 0x181   : > { %2580 = vmatprep.subr.bf16.mxu0 %v4053_v3  ;;  %2621 = vmatprep.subr.bf16.mxu1 %v4056_v4  ;;  %v4136_v2 = vld [vmem:[#allocation8 + $0x248] ss:$16 sps:$4 sm:$0xff]   ;;  %v4141_v3 = vld [vmem:[#allocation8 + $0x6c] ss:$16 sps:$4 sm:$0xff]  }
 0x182   : > { %v4144_v4 = vld [vmem:[#allocation8 + $0x26c] ss:$16 sps:$4 sm:$0xff]  }
 0x184   : > { %2581 = vmatpush1.bf16.msra.mxu0 %v4051_v5  ;;  %2622 = vmatpush1.bf16.msra.mxu1 %v4054_v6  ;;  %v4139_v5 = vld [vmem:[#allocation8 + $0x68] ss:$16 sps:$4 sm:$0xff]  }
 0x185   : > { %2582 = vmatprep.subr.bf16.mxu0 %v4059_v7  ;;  %2623 = vmatprep.subr.bf16.mxu1 %v4062_v8  ;;  %v4142_v6 = vld [vmem:[#allocation8 + $0x268] ss:$16 sps:$4 sm:$0xff]   ;;  %v4147_v7 = vld [vmem:[#allocation8 + $0x8c] ss:$16 sps:$4 sm:$0xff]  }
 0x186   : > { %v4150_v8 = vld [vmem:[#allocation8 + $0x28c] ss:$16 sps:$4 sm:$0xff]  }
 0x188   : > { %2583 = vmatpush1.bf16.msra.mxu0 %v4057_v9  ;;  %2624 = vmatpush1.bf16.msra.mxu1 %v4060_v10  ;;  %v4145_v9 = vld [vmem:[#allocation8 + $0x88] ss:$16 sps:$4 sm:$0xff]   ;;  %v4156_v10 = vld [vmem:[#allocation8 + $0x2ac] ss:$16 sps:$4 sm:$0xff]  }
 0x189   : > { %2584 = vmatprep.subr.bf16.mxu0 %v4065_v11  ;;  %2625 = vmatprep.subr.bf16.mxu1 %v4068_v12  ;;  %v4151_v11 = vld [vmem:[#allocation8 + $0xa8] ss:$16 sps:$4 sm:$0xff]  }
 0x18a   : > { %v4154_v12 = vld [vmem:[#allocation8 + $0x2a8] ss:$16 sps:$4 sm:$0xff]  }
 0x18c   : > { %2585 = vmatpush1.bf16.msra.mxu0 %v4063_v15  ;;  %2626 = vmatpush1.bf16.msra.mxu1 %v4066_v16  ;;  %v4159_v15 = vld [vmem:[#allocation8 + $0xcc] ss:$16 sps:$4 sm:$0xff]  }
 0x18d   : > { %2586 = vmatprep.subr.bf16.mxu0 %v4071_v17  ;;  %2627 = vmatprep.subr.bf16.mxu1 %v4074_v18  ;;  %v4162_v16 = vld [vmem:[#allocation8 + $0x2cc] ss:$16 sps:$4 sm:$0xff]   ;;  %v4157_v17 = vld [vmem:[#allocation8 + $0xc8] ss:$16 sps:$4 sm:$0xff]  }
 0x18e   : > { %v4160_v18 = vld [vmem:[#allocation8 + $0x2c8] ss:$16 sps:$4 sm:$0xff]  }
 0x190   : > { %2587 = vmatpush1.bf16.msra.mxu0 %v4069_v19  ;;  %2628 = vmatpush1.bf16.msra.mxu1 %v4072_v20  ;;  %v4165_v19 = vld [vmem:[#allocation8 + $0xec] ss:$16 sps:$4 sm:$0xff]  }
 0x191   : > { %2588 = vmatprep.subr.bf16.mxu0 %v4077_v21  ;;  %2629 = vmatprep.subr.bf16.mxu1 %v4080_v22  ;;  %v4168_v20 = vld [vmem:[#allocation8 + $0x2ec] ss:$16 sps:$4 sm:$0xff]   ;;  %v4163_v21 = vld [vmem:[#allocation8 + $0xe8] ss:$16 sps:$4 sm:$0xff]  }
 0x192   : > { %v4166_v22 = vld [vmem:[#allocation8 + $0x2e8] ss:$16 sps:$4 sm:$0xff]  }
 0x194   : > { %2589 = vmatpush1.bf16.msra.mxu0 %v4075_v23  ;;  %2630 = vmatpush1.bf16.msra.mxu1 %v4078_v24  ;;  %v4171_v23 = vld [vmem:[#allocation8 + $0x10c] ss:$16 sps:$4 sm:$0xff]  }
 0x195   : > { %2590 = vmatprep.subr.bf16.mxu0 %v4083_v25  ;;  %2631 = vmatprep.subr.bf16.mxu1 %v4086_v26  ;;  %v4174_v24 = vld [vmem:[#allocation8 + $0x30c] ss:$16 sps:$4 sm:$0xff]   ;;  %v4169_v25 = vld [vmem:[#allocation8 + $0x108] ss:$16 sps:$4 sm:$0xff]  }
 0x196   : > { %v4172_v26 = vld [vmem:[#allocation8 + $0x308] ss:$16 sps:$4 sm:$0xff]  }
 0x198   : > { %2591 = vmatpush1.bf16.msra.mxu0 %v4081_v27  ;;  %2632 = vmatpush1.bf16.msra.mxu1 %v4084_v28  ;;  %v4177_v27 = vld [vmem:[#allocation8 + $0x12c] ss:$16 sps:$4 sm:$0xff]  }
 0x199   : > { %2592 = vmatprep.subr.bf16.mxu0 %v4089_v29  ;;  %2633 = vmatprep.subr.bf16.mxu1 %v4092_v30  ;;  %v4180_v28 = vld [vmem:[#allocation8 + $0x32c] ss:$16 sps:$4 sm:$0xff]   ;;  %v4175_v29 = vld [vmem:[#allocation8 + $0x128] ss:$16 sps:$4 sm:$0xff]  }
 0x19a   : > { %v4178_v30 = vld [vmem:[#allocation8 + $0x328] ss:$16 sps:$4 sm:$0xff]  }
 0x19c   : > { %2593 = vmatpush1.bf16.msra.mxu0 %v4087_v31  ;;  %2634 = vmatpush1.bf16.msra.mxu1 %v4090_v32  ;;  %v4183_v31 = vld [vmem:[#allocation8 + $0x14c] ss:$16 sps:$4 sm:$0xff]  }
 0x19d   : > { %2594 = vmatprep.subr.bf16.mxu0 %v4095_v33  ;;  %2635 = vmatprep.subr.bf16.mxu1 %v4098_v34  ;;  %v4186_v32 = vld [vmem:[#allocation8 + $0x34c] ss:$16 sps:$4 sm:$0xff]   ;;  %v4181_v33 = vld [vmem:[#allocation8 + $0x148] ss:$16 sps:$4 sm:$0xff]  }
 0x19e   : > { %v4184_v34 = vld [vmem:[#allocation8 + $0x348] ss:$16 sps:$4 sm:$0xff]  }
 0x1a0   : > { %2595 = vmatpush1.bf16.msra.mxu0 %v4093_v35  ;;  %2636 = vmatpush1.bf16.msra.mxu1 %v4096_v36  ;;  %v4189_v35 = vld [vmem:[#allocation8 + $0x16c] ss:$16 sps:$4 sm:$0xff]  }
 0x1a1   : > { %2596 = vmatprep.subr.bf16.mxu0 %v4101_v37  ;;  %2637 = vmatprep.subr.bf16.mxu1 %v4104_v38  ;;  %v4192_v36 = vld [vmem:[#allocation8 + $0x36c] ss:$16 sps:$4 sm:$0xff]   ;;  %v4187_v37 = vld [vmem:[#allocation8 + $0x168] ss:$16 sps:$4 sm:$0xff]  }
 0x1a2   : > { %v4190_v38 = vld [vmem:[#allocation8 + $0x368] ss:$16 sps:$4 sm:$0xff]  }
 0x1a4   : > { %2597 = vmatpush1.bf16.msra.mxu0 %v4099_v39  ;;  %2638 = vmatpush1.bf16.msra.mxu1 %v4102_v40  ;;  %v4195_v39 = vld [vmem:[#allocation8 + $0x18c] ss:$16 sps:$4 sm:$0xff]  }
 0x1a5   : > { %2598 = vmatprep.subr.bf16.mxu0 %v4107_v41  ;;  %2639 = vmatprep.subr.bf16.mxu1 %v4110_v42  ;;  %v4198_v40 = vld [vmem:[#allocation8 + $0x38c] ss:$16 sps:$4 sm:$0xff]   ;;  %v4193_v41 = vld [vmem:[#allocation8 + $0x188] ss:$16 sps:$4 sm:$0xff]  }
 0x1a6   : > { %v4196_v42 = vld [vmem:[#allocation8 + $0x388] ss:$16 sps:$4 sm:$0xff]  }
 0x1a8   : > { %2599 = vmatpush1.bf16.msra.mxu0 %v4105_v45  ;;  %2640 = vmatpush1.bf16.msra.mxu1 %v4108_v46  ;;  %v4201_v45 = vld [vmem:[#allocation8 + $0x1ac] ss:$16 sps:$4 sm:$0xff]  }
 0x1a9   : > { %2600 = vmatprep.subr.bf16.mxu0 %v4113_v47  ;;  %2641 = vmatprep.subr.bf16.mxu1 %v4116_v48  ;;  %v4204_v46 = vld [vmem:[#allocation8 + $0x3ac] ss:$16 sps:$4 sm:$0xff]   ;;  %v4199_v47 = vld [vmem:[#allocation8 + $0x1a8] ss:$16 sps:$4 sm:$0xff]  }
 0x1aa   : > { %v4202_v48 = vld [vmem:[#allocation8 + $0x3a8] ss:$16 sps:$4 sm:$0xff]  }
 0x1ac   : > { %2601 = vmatpush1.bf16.msra.mxu0 %v4111_v49  ;;  %2642 = vmatpush1.bf16.msra.mxu1 %v4114_v50  ;;  %v4207_v49 = vld [vmem:[#allocation8 + $0x1cc] ss:$16 sps:$4 sm:$0xff]  }
 0x1ad   : > { %2652 = vmatprep.subr.bf16.mxu0 %v4123_v51  ;;  %2693 = vmatprep.subr.bf16.mxu1 %v4126_v52  ;;  %v4210_v50 = vld [vmem:[#allocation8 + $0x3cc] ss:$16 sps:$4 sm:$0xff]   ;;  %v4205_v51 = vld [vmem:[#allocation8 + $0x1c8] ss:$16 sps:$4 sm:$0xff]  }
 0x1ae   : > { %v4208_v52 = vld [vmem:[#allocation8 + $0x3c8] ss:$16 sps:$4 sm:$0xff]  }
 0x1af   : > { %2603 = vmatmul.mubr.bf16.vlgmr.msra.gmra.mrb[8].mxu0 %v5257_v53  ;;  %2644 = vmatmul.mubr.bf16.vlgmr.msra.gmra.mrb[8].mxu1 %v5261_v54 }
 0x1b0   : > { %2653 = vmatpush1.bf16.msra.mxu0 %v4121_v55  ;;  %2694 = vmatpush1.bf16.msra.mxu1 %v4124_v56  ;;  %v4213_v55 = vld [vmem:[#allocation8 + $0x1ec] ss:$16 sps:$4 sm:$0xff]  }
 0x1b1   : > { %2654 = vmatprep.subr.bf16.mxu0 %v4129_v57  ;;  %2695 = vmatprep.subr.bf16.mxu1 %v4132_v58  ;;  %v4216_v56 = vld [vmem:[#allocation8 + $0x3ec] ss:$16 sps:$4 sm:$0xff]   ;;  %v4211_v57 = vld [vmem:[#allocation8 + $0x1e8] ss:$16 sps:$4 sm:$0xff]  }
 0x1b2   : > { %2684 = vmatprep.mubr.bf16.mxu0 %v5221_v13  ;;  %2725 = vmatprep.mubr.bf16.mxu1 %v5225_v14  ;;  %v4148_v13 = vld [vmem:[#allocation8 + $0x288] ss:$16 sps:$4 sm:$0xff]   ;;  %v4153_v14 = vld [vmem:[#allocation8 + $0xac] ss:$16 sps:$4 sm:$0xff]  }
 0x1b3   : > { %v4214_v58 = vld [vmem:[#allocation8 + $0x3e8] ss:$16 sps:$4 sm:$0xff]  }
 0x1b4   : > { %2655 = vmatpush1.bf16.msra.mxu0 %v4127_v62  ;;  %2696 = vmatpush1.bf16.msra.mxu1 %v4130_v59  ;;  %v4219_v62 = vld [vmem:[#allocation8 + $0x40c] ss:$16 sps:$4 sm:$0xff]  }
 0x1b5   : > { %2656 = vmatprep.subr.bf16.mxu0 %v4135_v61  ;;  %2697 = vmatprep.subr.bf16.mxu1 %v4138_v63  ;;  %v4222_v59 = vld [vmem:[#allocation8 + $0x60c] ss:$16 sps:$4 sm:$0xff]   ;;  %v4217_v61 = vld [vmem:[#allocation8 + $0x408] ss:$16 sps:$4 sm:$0xff]  }
 0x1b6   : > { %v4220_v63 = vld [vmem:[#allocation8 + $0x608] ss:$16 sps:$4 sm:$0xff]  }
 0x1b8   : > { %2657 = vmatpush1.bf16.msra.mxu0 %v4133_v1  ;;  %2698 = vmatpush1.bf16.msra.mxu1 %v4136_v2  ;;  %v4225_v1 = vld [vmem:[#allocation8 + $0x42c] ss:$16 sps:$4 sm:$0xff]  }
 0x1b9   : > { %2658 = vmatprep.subr.bf16.mxu0 %v4141_v3  ;;  %2699 = vmatprep.subr.bf16.mxu1 %v4144_v4  ;;  %v4228_v2 = vld [vmem:[#allocation8 + $0x62c] ss:$16 sps:$4 sm:$0xff]   ;;  %v4223_v3 = vld [vmem:[#allocation8 + $0x428] ss:$16 sps:$4 sm:$0xff]  }
 0x1ba   : > { %v4226_v4 = vld [vmem:[#allocation8 + $0x628] ss:$16 sps:$4 sm:$0xff]  }
 0x1bc   : > { %2659 = vmatpush1.bf16.msra.mxu0 %v4139_v5  ;;  %2700 = vmatpush1.bf16.msra.mxu1 %v4142_v6  ;;  %v4231_v5 = vld [vmem:[#allocation8 + $0x44c] ss:$16 sps:$4 sm:$0xff]  }
 0x1bd   : > { %2660 = vmatprep.subr.bf16.mxu0 %v4147_v7  ;;  %2701 = vmatprep.subr.bf16.mxu1 %v4150_v8  ;;  %v4234_v6 = vld [vmem:[#allocation8 + $0x64c] ss:$16 sps:$4 sm:$0xff]   ;;  %v4229_v7 = vld [vmem:[#allocation8 + $0x448] ss:$16 sps:$4 sm:$0xff]  }
 0x1be   : > { %v4232_v8 = vld [vmem:[#allocation8 + $0x648] ss:$16 sps:$4 sm:$0xff]  }
 0x1c0   : > { %2661 = vmatpush1.bf16.msra.mxu0 %v4145_v9  ;;  %2702 = vmatpush1.bf16.msra.mxu1 %v4148_v13  ;;  %v4235_v9 = vld [vmem:[#allocation8 + $0x468] ss:$16 sps:$4 sm:$0xff]  }
 0x1c1   : > { %2662 = vmatprep.subr.bf16.mxu0 %v4153_v14  ;;  %2703 = vmatprep.subr.bf16.mxu1 %v4156_v10  ;;  %v4238_v13 = vld [vmem:[#allocation8 + $0x668] ss:$16 sps:$4 sm:$0xff]   ;;  %v4243_v14 = vld [vmem:[#allocation8 + $0x48c] ss:$16 sps:$4 sm:$0xff]  }
 0x1c2   : > { %v4246_v10 = vld [vmem:[#allocation8 + $0x68c] ss:$16 sps:$4 sm:$0xff]  }
 0x1c4   : > { %2663 = vmatpush1.bf16.msra.mxu0 %v4151_v11  ;;  %2704 = vmatpush1.bf16.msra.mxu1 %v4154_v12  ;;  %v4249_v11 = vld [vmem:[#allocation8 + $0x4ac] ss:$16 sps:$4 sm:$0xff]  }
 0x1c5   : > { %2664 = vmatprep.subr.bf16.mxu0 %v4159_v15  ;;  %2705 = vmatprep.subr.bf16.mxu1 %v4162_v16  ;;  %v4252_v12 = vld [vmem:[#allocation8 + $0x6ac] ss:$16 sps:$4 sm:$0xff]   ;;  %v4247_v15 = vld [vmem:[#allocation8 + $0x4a8] ss:$16 sps:$4 sm:$0xff]  }
 0x1c6   : > { %v4250_v16 = vld [vmem:[#allocation8 + $0x6a8] ss:$16 sps:$4 sm:$0xff]  }
 0x1c8   : > { %2665 = vmatpush1.bf16.msra.mxu0 %v4157_v17  ;;  %2706 = vmatpush1.bf16.msra.mxu1 %v4160_v18  ;;  %v4255_v17 = vld [vmem:[#allocation8 + $0x4cc] ss:$16 sps:$4 sm:$0xff]  }
 0x1c9   : > { %2666 = vmatprep.subr.bf16.mxu0 %v4165_v19  ;;  %2707 = vmatprep.subr.bf16.mxu1 %v4168_v20  ;;  %v4258_v18 = vld [vmem:[#allocation8 + $0x6cc] ss:$16 sps:$4 sm:$0xff]  }
 0x1cc   : > { %2667 = vmatpush1.bf16.msra.mxu0 %v4163_v21  ;;  %2708 = vmatpush1.bf16.msra.mxu1 %v4166_v22 }
 0x1cd   : > { %2668 = vmatprep.subr.bf16.mxu0 %v4171_v23  ;;  %2709 = vmatprep.subr.bf16.mxu1 %v4174_v24 }
 0x1d0   : > { %2669 = vmatpush1.bf16.msra.mxu0 %v4169_v25  ;;  %2710 = vmatpush1.bf16.msra.mxu1 %v4172_v26  ;;  %v4253_v25 = vld [vmem:[#allocation8 + $0x4c8] ss:$16 sps:$4 sm:$0xff]  }
 0x1d1   : > { %2670 = vmatprep.subr.bf16.mxu0 %v4177_v27  ;;  %2711 = vmatprep.subr.bf16.mxu1 %v4180_v28  ;;  %v4256_v26 = vld [vmem:[#allocation8 + $0x6c8] ss:$16 sps:$4 sm:$0xff]  }
 0x1d4   : > { %2671 = vmatpush1.bf16.msra.mxu0 %v4175_v29  ;;  %2712 = vmatpush1.bf16.msra.mxu1 %v4178_v30  ;;  %v4261_v29 = vld [vmem:[#allocation8 + $0x4ec] ss:$16 sps:$4 sm:$0xff]  }
 0x1d5   : > { %2672 = vmatprep.subr.bf16.mxu0 %v4183_v31  ;;  %2713 = vmatprep.subr.bf16.mxu1 %v4186_v32  ;;  %v4264_v30 = vld [vmem:[#allocation8 + $0x6ec] ss:$16 sps:$4 sm:$0xff]   ;;  %v4259_v31 = vld [vmem:[#allocation8 + $0x4e8] ss:$16 sps:$4 sm:$0xff]  }
 0x1d6   : > { %v4262_v32 = vld [vmem:[#allocation8 + $0x6e8] ss:$16 sps:$4 sm:$0xff]  }
 0x1d8   : > { %2673 = vmatpush1.bf16.msra.mxu0 %v4181_v33  ;;  %2714 = vmatpush1.bf16.msra.mxu1 %v4184_v34  ;;  %v4267_v33 = vld [vmem:[#allocation8 + $0x50c] ss:$16 sps:$4 sm:$0xff]  }
 0x1d9   : > { %2674 = vmatprep.subr.bf16.mxu0 %v4189_v35  ;;  %2715 = vmatprep.subr.bf16.mxu1 %v4192_v36  ;;  %v4270_v34 = vld [vmem:[#allocation8 + $0x70c] ss:$16 sps:$4 sm:$0xff]   ;;  %v4265_v35 = vld [vmem:[#allocation8 + $0x508] ss:$16 sps:$4 sm:$0xff]  }
 0x1da   : > { %v4268_v36 = vld [vmem:[#allocation8 + $0x708] ss:$16 sps:$4 sm:$0xff]  }
 0x1dc   : > { %2675 = vmatpush1.bf16.msra.mxu0 %v4187_v37  ;;  %2716 = vmatpush1.bf16.msra.mxu1 %v4190_v38  ;;  %v4273_v37 = vld [vmem:[#allocation8 + $0x52c] ss:$16 sps:$4 sm:$0xff]  }
 0x1dd   : > { %2676 = vmatprep.subr.bf16.mxu0 %v4195_v39  ;;  %2717 = vmatprep.subr.bf16.mxu1 %v4198_v40  ;;  %v4276_v38 = vld [vmem:[#allocation8 + $0x72c] ss:$16 sps:$4 sm:$0xff]   ;;  %v4271_v39 = vld [vmem:[#allocation8 + $0x528] ss:$16 sps:$4 sm:$0xff]  }
 0x1de   : > { %v4274_v40 = vld [vmem:[#allocation8 + $0x728] ss:$16 sps:$4 sm:$0xff]  }
 0x1e0   : > { %2677 = vmatpush1.bf16.msra.mxu0 %v4193_v41  ;;  %2718 = vmatpush1.bf16.msra.mxu1 %v4196_v42  ;;  %v4279_v41 = vld [vmem:[#allocation8 + $0x54c] ss:$16 sps:$4 sm:$0xff]  }
 0x1e1   : > { %2678 = vmatprep.subr.bf16.mxu0 %v4201_v45  ;;  %2719 = vmatprep.subr.bf16.mxu1 %v4204_v46  ;;  %v4282_v42 = vld [vmem:[#allocation8 + $0x74c] ss:$16 sps:$4 sm:$0xff]   ;;  %v4277_v45 = vld [vmem:[#allocation8 + $0x548] ss:$16 sps:$4 sm:$0xff]  }
 0x1e2   : > { %v4280_v46 = vld [vmem:[#allocation8 + $0x748] ss:$16 sps:$4 sm:$0xff]  }
 0x1e4   : > { %2679 = vmatpush1.bf16.msra.mxu0 %v4199_v47  ;;  %2720 = vmatpush1.bf16.msra.mxu1 %v4202_v48  ;;  %v4285_v47 = vld [vmem:[#allocation8 + $0x56c] ss:$16 sps:$4 sm:$0xff]  }
 0x1e5   : > { %2680 = vmatprep.subr.bf16.mxu0 %v4207_v49  ;;  %2721 = vmatprep.subr.bf16.mxu1 %v4210_v50  ;;  %v4288_v48 = vld [vmem:[#allocation8 + $0x76c] ss:$16 sps:$4 sm:$0xff]   ;;  %v4283_v49 = vld [vmem:[#allocation8 + $0x568] ss:$16 sps:$4 sm:$0xff]  }
 0x1e6   : > { %v4286_v50 = vld [vmem:[#allocation8 + $0x768] ss:$16 sps:$4 sm:$0xff]  }
 0x1e8   : > { %2681 = vmatpush1.bf16.msra.mxu0 %v4205_v51  ;;  %2722 = vmatpush1.bf16.msra.mxu1 %v4208_v52  ;;  %v4291_v51 = vld [vmem:[#allocation8 + $0x58c] ss:$16 sps:$4 sm:$0xff]  }
 0x1e9   : > { %2682 = vmatprep.subr.bf16.mxu0 %v4213_v55  ;;  %2723 = vmatprep.subr.bf16.mxu1 %v4216_v56  ;;  %v4294_v52 = vld [vmem:[#allocation8 + $0x78c] ss:$16 sps:$4 sm:$0xff]   ;;  %v4289_v55 = vld [vmem:[#allocation8 + $0x588] ss:$16 sps:$4 sm:$0xff]  }
 0x1ea   : > { %v4292_v56 = vld [vmem:[#allocation8 + $0x788] ss:$16 sps:$4 sm:$0xff]  }
 0x1ec   : > { %2683 = vmatpush1.bf16.msra.mxu0 %v4211_v57  ;;  %2724 = vmatpush1.bf16.msra.mxu1 %v4214_v58  ;;  %v4297_v57 = vld [vmem:[#allocation8 + $0x5ac] ss:$16 sps:$4 sm:$0xff]  }
 0x1ed   : > { %2734 = vmatprep.subr.bf16.mxu0 %v4219_v62  ;;  %2775 = vmatprep.subr.bf16.mxu1 %v4222_v59  ;;  %v4300_v58 = vld [vmem:[#allocation8 + $0x7ac] ss:$16 sps:$4 sm:$0xff]   ;;  %v4295_v62 = vld [vmem:[#allocation8 + $0x5a8] ss:$16 sps:$4 sm:$0xff]  }
 0x1ee   : > { %v4298_v59 = vld [vmem:[#allocation8 + $0x7a8] ss:$16 sps:$4 sm:$0xff]  }
 0x1ef   : > { %2685 = vmatmul.mubr.bf16.vlgmr.msra.gmra.mrb[12].mxu0 %v5231_v43  ;;  %2726 = vmatmul.mubr.bf16.vlgmr.msra.gmra.mrb[12].mxu1 %v5235_v44  ;;  %v4237_v43 = vld [vmem:[#allocation8 + $0x46c] ss:$16 sps:$4 sm:$0xff]  }
 0x1f0   : > { %2735 = vmatpush1.bf16.msra.mxu0 %v4217_v61  ;;  %2776 = vmatpush1.bf16.msra.mxu1 %v4220_v63  ;;  %v4240_v44 = vld [vmem:[#allocation8 + $0x66c] ss:$16 sps:$4 sm:$0xff]  }
 0x1f1   : > { %2736 = vmatprep.subr.bf16.mxu0 %v4225_v1  ;;  %2777 = vmatprep.subr.bf16.mxu1 %v4228_v2  ;;  %v4303_v61 = vld [vmem:[#allocation8 + $0x5cc] ss:$16 sps:$4 sm:$0xff]   ;;  %v4301_v1 = vld [vmem:[#allocation8 + $0x5c8] ss:$16 sps:$4 sm:$0xff]  }
 0x1f2   : > { %2766 = vmatprep.mubr.bf16.mxu0 %v5244_v60  ;;  %2807 = vmatprep.mubr.bf16.mxu1 %v5251_v0  ;;  %v4241_v60 = vld [vmem:[#allocation8 + $0x488] ss:$16 sps:$4 sm:$0xff]   ;;  %v4306_v63 = vld [vmem:[#allocation8 + $0x7cc] ss:$16 sps:$4 sm:$0xff]  }
 0x1f3   : > { %v4244_v0 = vld [vmem:[#allocation8 + $0x688] ss:$16 sps:$4 sm:$0xff]  }
 0x1f4   : > { %2737 = vmatpush1.bf16.msra.mxu0 %v4223_v3  ;;  %2778 = vmatpush1.bf16.msra.mxu1 %v4226_v4  ;;  %v4304_v2 = vld [vmem:[#allocation8 + $0x7c8] ss:$16 sps:$4 sm:$0xff]   ;;  %v4309_v3 = vld [vmem:[#allocation8 + $0x5ec] ss:$16 sps:$4 sm:$0xff]  }
 0x1f5   : > { %2738 = vmatprep.subr.bf16.mxu0 %v4231_v5  ;;  %2779 = vmatprep.subr.bf16.mxu1 %v4234_v6  ;;  %v4312_v4 = vld [vmem:[#allocation8 + $0x7ec] ss:$16 sps:$4 sm:$0xff]   ;;  %v4307_v5 = vld [vmem:[#allocation8 + $0x5e8] ss:$16 sps:$4 sm:$0xff]  }
 0x1f6   : > { %v4310_v6 = vld [vmem:[#allocation8 + $0x7e8] ss:$16 sps:$4 sm:$0xff]  }
 0x1f8   : > { %2739 = vmatpush1.bf16.msra.mxu0 %v4229_v7  ;;  %2780 = vmatpush1.bf16.msra.mxu1 %v4232_v8 }
 0x1f9   : > { %2740 = vmatprep.subr.bf16.mxu0 %v4237_v43  ;;  %2781 = vmatprep.subr.bf16.mxu1 %v4240_v44 }
 0x1fc   : > { %2741 = vmatpush1.bf16.msra.mxu0 %v4235_v9  ;;  %2782 = vmatpush1.bf16.msra.mxu1 %v4238_v13 }
 0x1fd   : > { %2742 = vmatprep.subr.bf16.mxu0 %v4243_v14  ;;  %2783 = vmatprep.subr.bf16.mxu1 %v4246_v10 }
 0x200   : > { %2743 = vmatpush1.bf16.msra.mxu0 %v4241_v60  ;;  %2784 = vmatpush1.bf16.msra.mxu1 %v4244_v0 }
 0x201   : > { %2744 = vmatprep.subr.bf16.mxu0 %v4249_v11  ;;  %2785 = vmatprep.subr.bf16.mxu1 %v4252_v12 }
 0x202   : > { %v5271_v19 = vpop.f32.mrb[0].mxu0  ;;  %v5273_v20 = vpop.f32.mrb[0].mxu1 }
 0x203   : > { %v5275_v21 = vpop.f32.mrb[1].mxu0  ;;  %v5277_v22 = vpop.f32.mrb[1].mxu1 }
 0x204   : > { %v1136_v23 = vpop.f32.mrb[2].mxu0  ;;  %v1177_v24 = vpop.f32.mrb[2].mxu1  ;;  %2745 = vmatpush1.bf16.msra.mxu0 %v4247_v15  ;;  %2786 = vmatpush1.bf16.msra.mxu1 %v4250_v16 }
 0x205   : > { %v1137_v27 = vpop.f32.mrb[3].mxu0  ;;  %v1178_v28 = vpop.f32.mrb[3].mxu1  ;;  %2746 = vmatprep.subr.bf16.mxu0 %v4255_v17  ;;  %2787 = vmatprep.subr.bf16.mxu1 %v4258_v18 }
 0x206   : > { %v4313_v28 = vld [vmem:[#allocation11] sm:$0xff]  }
 0x208   : > { %2747 = vmatpush1.bf16.msra.mxu0 %v4253_v25  ;;  %2788 = vmatpush1.bf16.msra.mxu1 %v4256_v26 }
 0x209   : > { %2748 = vmatprep.subr.bf16.mxu0 %v4261_v29  ;;  %2789 = vmatprep.subr.bf16.mxu1 %v4264_v30  ;;  %v4314_v29 = vld [vmem:[#allocation11 + $0x8] sm:$0xff]   ;;  %v4315_v30 = vld [vmem:[#allocation11 + $0x10] sm:$0xff]  }
 0x20c   : > { %2749 = vmatpush1.bf16.msra.mxu0 %v4259_v31  ;;  %2790 = vmatpush1.bf16.msra.mxu1 %v4262_v32  ;;  %v4316_v31 = vld [vmem:[#allocation11 + $0x18] sm:$0xff]   ;;  %v4317_v32 = vld [vmem:[#allocation11 + $0x20] sm:$0xff]  }
 0x20d   : > { %2750 = vmatprep.subr.bf16.mxu0 %v4267_v33  ;;  %2791 = vmatprep.subr.bf16.mxu1 %v4270_v34  ;;  %v4318_v33 = vld [vmem:[#allocation11 + $0x28] sm:$0xff]   ;;  %v4319_v34 = vld [vmem:[#allocation11 + $0x30] sm:$0xff]  }
 0x210   : > { %2751 = vmatpush1.bf16.msra.mxu0 %v4265_v35  ;;  %2792 = vmatpush1.bf16.msra.mxu1 %v4268_v36  ;;  %v4320_v35 = vld [vmem:[#allocation11 + $0x38] sm:$0xff]  }
 0x211   : > { %2752 = vmatprep.subr.bf16.mxu0 %v4273_v37  ;;  %2793 = vmatprep.subr.bf16.mxu1 %v4276_v38 }
 0x214   : > { %2753 = vmatpush1.bf16.msra.mxu0 %v4271_v39  ;;  %2794 = vmatpush1.bf16.msra.mxu1 %v4274_v40 }
 0x215   : > { %2754 = vmatprep.subr.bf16.mxu0 %v4279_v41  ;;  %2795 = vmatprep.subr.bf16.mxu1 %v4282_v42 }
 0x218   : > { %2755 = vmatpush1.bf16.msra.mxu0 %v4277_v45  ;;  %2796 = vmatpush1.bf16.msra.mxu1 %v4280_v46 }
 0x219   : > { %2756 = vmatprep.subr.bf16.mxu0 %v4285_v47  ;;  %2797 = vmatprep.subr.bf16.mxu1 %v4288_v48 }
 0x21c   : > { %2757 = vmatpush1.bf16.msra.mxu0 %v4283_v49  ;;  %2798 = vmatpush1.bf16.msra.mxu1 %v4286_v50  ;;  %v2818_v50 = vlaneseq }
 0x21d   : > { %2758 = vmatprep.subr.bf16.mxu0 %v4291_v51  ;;  %2799 = vmatprep.subr.bf16.mxu1 %v4294_v52 }
 0x21e   : > { %v2819_v51 = vshrl.u32 %v2818_v50, 7 }
 0x220   : > { %2759 = vmatpush1.bf16.msra.mxu0 %v4289_v55  ;;  %2800 = vmatpush1.bf16.msra.mxu1 %v4292_v56  ;;  %v2824_v52 = vsub.s32 1, %v2819_v51  ;;  %v2816_v55 = vld [vmem:[%s5555_s23] sm:$0xf]  ;;  %v2820_v56 = vsub.s32 0, %v2819_v51 }
 0x221   : > { %2760 = vmatprep.subr.bf16.mxu0 %v4297_v57  ;;  %2801 = vmatprep.subr.bf16.mxu1 %v4300_v58 }
 0x222   : > { %v2821_v57 = vrot.slane %v2816_v55, %v2820_v56  ;;  %v4788_v56 = vmov 8  }
 0x223   : > { %3871 = vset.pattern.permute.xlu1 %v4788_v56  ;;  %3872 = vset.pattern.permute.xlu0 %v4788_v56 }
 0x224   : > { %2761 = vmatpush1.bf16.msra.mxu0 %v4295_v62  ;;  %2802 = vmatpush1.bf16.msra.mxu1 %v4298_v59 }
 0x225   : > { %2762 = vmatprep.subr.bf16.mxu0 %v4303_v61  ;;  %2803 = vmatprep.subr.bf16.mxu1 %v4306_v63  ;;  %v2828_v61 = vsub.s32 2, %v2819_v51 }
 0x228   : > { %2763 = vmatpush1.bf16.msra.mxu0 %v4301_v1  ;;  %2804 = vmatpush1.bf16.msra.mxu1 %v4304_v2  ;;  %v2832_v1 = vsub.s32 3, %v2819_v51 }
 0x229   : > { %2764 = vmatprep.subr.bf16.mxu0 %v4309_v3  ;;  %2805 = vmatprep.subr.bf16.mxu1 %v4312_v4 }
 0x22c   : > { %2765 = vmatpush1.bf16.msra.mxu0 %v4307_v5  ;;  %2806 = vmatpush1.bf16.msra.mxu1 %v4310_v6 }
 0x22f   : > { %2767 = vmatmul.mubr.bf16.vlgmr.msra.gmra.mrb[16].mxu0 %v5257_v53  ;;  %2808 = vmatmul.mubr.bf16.vlgmr.msra.gmra.mrb[16].mxu1 %v5261_v54 }
 0x242   : > { %v2522_v7 = vpop.f32.mrb[4].mxu0  ;;  %v2563_v8 = vpop.f32.mrb[4].mxu1 }
 0x243   : > { %v2523_v43 = vadd.f32 %v2522_v7, %v5271_v19  ;;  %v2524_v44 = vpop.f32.mrb[5].mxu0  ;;  %v2565_v9 = vpop.f32.mrb[5].mxu1  ;;  %v2829_v7 = vrot.slane %v2816_v55, %v2828_v61 }
 0x244   : > { %v2525_v13 = vadd.f32 %v2524_v44, %v5275_v21  ;;  %v2526_v14 = vpop.f32.mrb[6].mxu0  ;;  %v2567_v10 = vpop.f32.mrb[6].mxu1  ;;  %v4786_v21 = vmov 0.0  }
 0x245   : > { %v2564_v60 = vadd.f32 %v2563_v8, %v2523_v43  ;;  %v2527_v0 = vpop.f32.mrb[7].mxu0  ;;  %v2568_v11 = vpop.f32.mrb[7].mxu1  ;;  %3712 = vmatprep.subr.bf16.mxu0 %v4786_v21  ;;  %3728 = vmatprep.mubr.msk.bf16.mxu0 %vm4787_vm0, %v4786_v21 }
 0x246   : > { %v2566_v12 = vadd.f32 %v2565_v9, %v2525_v13  ;;  %3713 = vmatpush3.bf16.msra.mxu0 %v4313_v28  ;;  %v2833_v13 = vrot.slane %v2816_v55, %v2832_v1 }
 0x247   : > { %3714 = vmatprep.subr.bf16.mxu0 %v4786_v21 }
 0x24a   : > { %3715 = vmatpush3.bf16.msra.mxu0 %v4314_v29 }
 0x24b   : > { %3716 = vmatprep.subr.bf16.mxu0 %v4786_v21 }
 0x24e   : > { %3717 = vmatpush3.bf16.msra.mxu0 %v4315_v30 }
 0x24f   : > { %3718 = vmatprep.subr.bf16.mxu0 %v4786_v21 }
 0x252   : > { %3719 = vmatpush3.bf16.msra.mxu0 %v4316_v31  ;;  %v2980_v31 = vld [vmem:[%s560_s19] sm:$0xff] }
 0x253   : > { %3720 = vmatprep.subr.bf16.mxu0 %v4786_v21  ;;  %vm2981_vm1 = vcmp.ne.s32.totalorder %v2980_v31, 0 }
 0x256   : > { %3721 = vmatpush3.bf16.msra.mxu0 %v4317_v32  ;;  %v3681_v32 = vld [vmem:[%s5556_s0] ss:$0 sm:$0xff] }
 0x257   : > { %3722 = vmatprep.subr.bf16.mxu0 %v4786_v21 }
 0x25a   : > { %3723 = vmatpush3.bf16.msra.mxu0 %v4318_v33 }
 0x25b   : > { %3724 = vmatprep.subr.bf16.mxu0 %v4786_v21 }
 0x25e   : > { %3725 = vmatpush3.bf16.msra.mxu0 %v4319_v34 }
 0x25f   : > { %3726 = vmatprep.subr.bf16.mxu0 %v4786_v21 }
 0x262   : > { %3727 = vmatpush3.bf16.msra.mxu0 %v4320_v35 }
 0x282   : > { %v2604_v15 = vpop.f32.mrb[8].mxu0  ;;  %v2645_v16 = vpop.f32.mrb[8].mxu1 }
 0x283   : > { %v2605_v17 = vadd.f32 %v2604_v15, %v2564_v60  ;;  %v2606_v53 = vpop.f32.mrb[9].mxu0  ;;  %v2647_v18 = vpop.f32.mrb[9].mxu1 }
 0x284   : > { %v2607_v54 = vadd.f32 %v2606_v53, %v2566_v12  ;;  %v2608_v23 = vpop.f32.mrb[10].mxu0  ;;  %v2649_v24 = vpop.f32.mrb[10].mxu1 }
 0x285   : > { %v2646_v25 = vadd.f32 %v2645_v16, %v2605_v17  ;;  %v2609_v19 = vpop.f32.mrb[11].mxu0  ;;  %v2650_v26 = vpop.f32.mrb[11].mxu1 }
 0x286   : > { %v2648_v27 = vadd.f32 %v2647_v18, %v2607_v54  ;;  %v644_v18 = vld [vmem:[#allocation21] sm:$0xff] }
 0x287   : > { %v2838_v62 = vadd.f32 %v2821_v57, %v2646_v25 }
 0x289   : > { %v3678_v59 = vmul.f32 -1.442695, %v2838_v62 }
 0x2c2   : > { %v2686_v36 = vpop.f32.mrb[12].mxu0  ;;  %v2727_v37 = vpop.f32.mrb[12].mxu1 }
 0x2c3   : > { %v2687_v38 = vadd.f32 %v2686_v36, %v5273_v20  ;;  %v2688_v39 = vpop.f32.mrb[13].mxu0  ;;  %v2729_v40 = vpop.f32.mrb[13].mxu1  ;;  %v2825_v20 = vrot.slane %v2816_v55, %v2824_v52  ;;  %v2997_v36 = vld [vmem:[%s569_s28] sm:$0xff] }
 0x2c4   : > { %v2689_v41 = vadd.f32 %v2688_v39, %v5277_v22  ;;  %v2690_v42 = vpop.f32.mrb[14].mxu0  ;;  %v2731_v45 = vpop.f32.mrb[14].mxu1 }
 0x2c5   : > { %v2728_v46 = vadd.f32 %v2727_v37, %v2687_v38  ;;  %v2691_v47 = vpop.f32.mrb[15].mxu0  ;;  %v2732_v48 = vpop.f32.mrb[15].mxu1  ;;  %v2839_v58 = vadd.f32 %v2825_v20, %v2648_v27  ;;  %v5299_v42 = vand.u32 127, %v2818_v50 }
 0x2c6   : > { %v2730_v49 = vadd.f32 %v2729_v40, %v2689_v41 }
 0x2c7   : > { %v3679_v22 = vmul.f32 -1.442695, %v2839_v58 }
 0x2c9   : > { %4321 = vpow2.f32 %v3679_v22 }
 0x2ca   : > { %4323 = vpow2.f32 %v3678_v59 }
 0x2d3   : > { %v4322_v63 = vpop.eup %4321 }
 0x2d4   : > { %v4324_v2 = vpop.eup %4323  ;;  %v2851_v5 = vadd.f32 1.0, %v4322_v63 }
 0x2d5   : > { %v2845_v44 = vadd.f32 1.0, %v4324_v2 }
 0x2d6   : > { %4325 = vrcp.f32 %v2851_v5 }
 0x2d7   : > { %4327 = vrcp.f32 %v2845_v44 }
 0x2e0   : > { %v4326_v53 = vpop.eup %4325 }
 0x2e1   : > { %v4328_v54 = vpop.eup %4327  ;;  %v2861_v24 = vmul.f32 %v4326_v53, %v644_v18 }
 0x302   : > { %v2768_v3 = vpop.f32.mrb[16].mxu0  ;;  %v2809_v4 = vpop.f32.mrb[16].mxu1 }
 0x303   : > { %v2769_v6 = vadd.f32 %v2768_v3, %v2728_v46  ;;  %v2770_v8 = vpop.f32.mrb[17].mxu0  ;;  %v2811_v43 = vpop.f32.mrb[17].mxu1 }
 0x304   : > { %v2771_v9 = vadd.f32 %v2770_v8, %v2730_v49  ;;  %v2772_v14 = vpop.f32.mrb[18].mxu0  ;;  %v2813_v10 = vpop.f32.mrb[18].mxu1 }
 0x305   : > { %v2810_v60 = vadd.f32 %v2809_v4, %v2769_v6  ;;  %v2773_v0 = vpop.f32.mrb[19].mxu0  ;;  %v2814_v11 = vpop.f32.mrb[19].mxu1 }
 0x306   : > { %v2812_v12 = vadd.f32 %v2811_v43, %v2771_v9 }
 0x307   : > { %v2840_v15 = vadd.f32 %v2829_v7, %v2810_v60 }
 0x308   : > { %v2841_v16 = vadd.f32 %v2833_v13, %v2812_v12 }
 0x309   : > { %4329 = vtanh.f32 %v2840_v15 }
 0x30a   : > { %v3680_v17 = vmul.f32 -1.442695, %v2841_v16 }
 0x30c   : > { %4331 = vpow2.f32 %v3680_v17 }
 0x313   : > { %v4330_v23 = vpop.eup %4329 }
 0x314   : > { %v2862_v25 = vmul.f32 %v4330_v23, %v4328_v54 }
 0x316   : > { %v4332_v19 = vpop.eup %4331  ;;  %v2863_v26 = vadd.f32 %v2862_v25, %v2861_v24 }
 0x317   : > { %v2858_v27 = vadd.f32 1.0, %v4332_v19 }
 0x318   : > { %4333 = vtanh.f32 %v2863_v26  ;;  %2867 = vst [vmem:[#allocation21] sm:$0xff] %v2863_v26 }
 0x319   : > { %4335 = vrcp.f32 %v2858_v27 }
 0x322   : > { %v4334_v28 = vpop.eup %4333 }
 0x323   : > { %v4336_v21 = vpop.eup %4335 }
 0x324   : > { %v2865_v29 = vmul.f32 %v4336_v21, %v4334_v28 }
 0x326   : > { %v2868_v30 = vpack.c.bf16 %v2865_v29, %v2865_v29  ;;  %2866 = vst [vmem:[#allocation19] sm:$0xff] %v2865_v29 }
 0x328   : > { %3729 = vmatmul.mubr.bf16.vlgmr.msra.gmra.mrb[20].mxu0 %v2868_v30 }
 0x3fb   : > { %v2974_v33 = vpop.f32.mrb[20].mxu0 }
 0x3fc   : > { %v2975_v34 = vadd.f32 %v3681_v32, %v2974_v33  ;;  %v3730_v35 = vpop.f32.mrb[21].mxu0 }
 0x3fd   : > { %v2977_v37 = vpop.f32.mrb[22].mxu0 }
 0x3fe   : > { %v3731_v38 = vpop.f32.mrb[23].mxu0  ;;  %v2996_v39 = vsel %vm2981_vm1, %v2975_v34, -1e+30  ;;  %v2982_v41 = vsel %vm2981_vm1, %v2975_v34, -3.4028235e+38 }
 0x3ff   : > { %v2998_v40 = vadd.f32 %v2997_v36, %v2996_v39 }
 0x401   : > { %2999 = vmax.xlane.f32.xlu0 %v2998_v40 }
 0x405   : > { %2983 = vmax.xlane.f32.xlu0 %v2982_v41 }
 0x48e   : > { %v3000_v45 = vpop.xlane.xlu0 %2999 }
 0x48f   : > { %vm3003_vm2 = vcmp.eq.f32.partialorder %v2998_v40, %v3000_v45 }
 0x490   : > { %v3004_v46 = vsel %vm3003_vm2, %v5299_v42, 128 }
 0x491   : > { %v3006_v47 = vshra.s32 %v3004_v46, 16  ;;  %v3005_v20 = vand.u32 65535, %v3004_v46 }
 0x492   : > { %v2984_v48 = vpop.xlane.xlu0 %2983 }
 0x493   : > { %v2985_v49 = vsub.f32 %v2982_v41, %v2984_v48  ;;  %v3008_v51 = vcvt.s32.f32 %v3006_v47  ;;  %v3007_v57 = vcvt.s32.f32 %v3005_v20 }
 0x495   : > { %v2986_v52 = vmul.f32 1.442695, %v2985_v49  ;;  %3009 = vmin.xlane.f32.xlu1 %v3008_v51 }
 0x497   : > { %4337 = vpow2.f32 %v2986_v52 }
 0x4a1   : > { %v4338_v55 = vpop.eup %4337 }
 0x4a2   : > { %2988 = vadd.xlane.f32.xlu1 %v4338_v55 }
 0x522   : > { %v3010_v50 = vpop.xlane.xlu1 %3009 }
 0x523   : > { %vm3011_vm3 = vcmp.eq.f32.partialorder %v3008_v51, %v3010_v50  ;;  %v3016_v5 = vcvt.f32.s32 %v3010_v50 }
 0x524   : > { %v3012_v58 = vsel %vm3011_vm3, %v3007_v57, inf }
 0x525   : > { %3013 = vmin.xlane.f32.xlu0 %v3012_v58  ;;  %v3017_v7 = vshll.u32 %v3016_v5, 16 }
 0x52f   : > { %v2989_v62 = vpop.xlane.xlu1 %2988 }
 0x530   : > { %4339 = vlog2.f32 %v2989_v62 }
 0x53a   : > { %v4340_v22 = vpop.eup %4339 }
 0x53b   : > { %v2991_v59 = vmul.f32 0.6931472, %v4340_v22 }
 0x53d   : > { %v2992_v61 = vadd.f32 %v2991_v59, %v2984_v48 }
 0x53f   : > { %v2993_v63 = vsub.f32 %v2982_v41, %v2992_v61 }
 0x541   : > { %v2994_v1 = vmul.f32 1.442695, %v2993_v63 }
 0x543   : > { %4341 = vpow2.f32 %v2994_v1 }
 0x54d   : > { %v4342_v2 = vpop.eup %4341 }
 0x54e   : > { %v3023_v3 = vmul.f32 %v4342_v2, %v2993_v63  ;;  %3028 = vst [vmem:[%s615_s13] sm:$0xff] %v4342_v2 }
 0x550   : > { %v3024_v4 = vsel %vm2981_vm1, %v3023_v3, 0.0 }
 0x551   : > { %3025 = vadd.xlane.f32.xlu1 %v3024_v4 }
 0x562   : > { %3035 = vperm.xlu1 %3871, %v2975_v34  }
 0x5b2   : > { %v3014_v6 = vpop.xlane.xlu0 %3013 }
 0x5b3   : > { %v3015_v8 = vcvt.f32.s32 %v3014_v6 }
 0x5b5   : > { %v3018_v43 = vadd.s32 %v3017_v7, %v3015_v8 }
 0x5b7   : > { %3029 = vst [vmem:[%s629_s25] sm:$0xff] %v3018_v43  ;;  %vm3019_vm4 = vcmp.eq.s32.totalorder %v5299_v42, %v3018_v43 }
 0x5b8   : > { %v3020_v44 = vsel %vm3019_vm4, %v2993_v63, 0.0 }
 0x5b9   : > { %3021 = vadd.xlane.f32.xlu0 %v3020_v44 }
 0x5ba   : > { %4586 = shalt.err (!%p4583_p7)
}
 0x5bb   : > { %s5558_s5 = sld [smem:[#allocation43_spill]]  ;;  %p5559_p10 = pmov %p5557_p5 }
 0x5c1   : > { %s4587_s7 = scalar_lea.hbm %s5558_s5, 128 }
 0x5c2   : > { %p4588_p6 = scmp.ne.s32.totalorder %s5558_s5, %s4587_s7  ;;  %p4593_p2 = scmp.lt.u32.totalorder %s4587_s7, %s5558_s5 }
 0x5c4   : > { %p4589_p0 = pnand %p4588_p6, %p5559_p10 }
 0x5c6   : > { %p4590_p9 = pneg %p4589_p0 }
 0x5c8   : > { %p4595_p3 = pnand %p4593_p2, %p4590_p9 }
 0x5ca   : > { %4598 = shalt.err (!%p4595_p3)
}
 0x5cb   : > { %p5560_p8 = pmov %p5557_p5  ;;  %s5561_s14 = sld [smem:[#allocation34_spill]] }
 0x5cc   : > { %s5562_s1 = sld [smem:[#allocation40_spill]]  ;;  %s3066_s29 = sshll.u32 %s615_s13, 4  ;;  %s3067_s29 = int_to_ptr.vmem [resolvable:$true] %s3066_s29 }
 0x5cd   : > { %3762 = dma.vmem_to_hbm [thread:$0]  (%p5560_p8), %s3104_s10, 128, %s5558_s5, [#allocation20]  }
 0x5ce   : > { %s3043_s7 = scalar_lea.sflag [#allocation4], %s5176_s26  ;;  %s4599_s19 = scalar_lea.vmem %s3067_s29, 128 }
 0x5cf   : > { %p4600_p5 = scmp.ne.s32.totalorder %s3067_s29, %s4599_s19  ;;  %s4790_s28 = smov [#allocation15]  }
 0x5d0   : > { %s4603_s24 = sshll.u32 %s4790_s28, 4  ;;  %s4604_s24 = int_to_ptr.vmem [resolvable:$false] %s4603_s24 }
 0x5d1   : > { %p5563_p12 = scmp.ne.s32.totalorder %s5561_s14, 0  ;;  %s4605_s27 = scalar_lea.vmem %s4604_s24, 256 }
 0x5d2   : > { %s5333_s22 = scalar_lea.hbm %s5562_s1, %s5309_s12  ;;  %p4606_p4 = scmp.lt.s32.totalorder %s3067_s29, %s4604_s24 }
 0x5d3   : > { %p4601_p11 = pnand %p4600_p5, %p5563_p12  ;;  %p4607_p1 = scmp.lt.s32.totalorder %s4605_s27, %s4599_s19 }
 0x5d5   : > { %p4602_p13 = pneg %p4601_p11  ;;  %p4608_p7 = por %p4607_p1, %p4606_p4 }
 0x5d7   : > { %p4609_p6 = pnand %p4608_p7, %p4602_p13 }
 0x5d9   : > { %4612 = shalt.err (!%p4609_p6)
}
 0x5da   : > { %s4613_s26 = scalar_lea.hbm %s5333_s22, 128  ;;  %s4617_s23 = scalar_lea.hbm %s5562_s1, 1024 }
 0x5db   : > { %p4614_p10 = scmp.ne.s32.totalorder %s5333_s22, %s4613_s26  ;;  %p4618_p2 = scmp.lt.u32.totalorder %s5333_s22, %s5562_s1 }
 0x5dc   : > { %p4619_p3 = scmp.lt.u32.totalorder %s4617_s23, %s4613_s26  ;;  %p4621_p5 = scmp.lt.u32.totalorder %s4613_s26, %s5333_s22 }
 0x5dd   : > { %p4615_p0 = pnand %p4614_p10, %p5563_p12 }
 0x5de   : > { %p4620_p8 = por %p4619_p3, %p4618_p2 }
 0x5df   : > { %p4616_p9 = pneg %p4615_p0 }
 0x5e0   : > { %p4622_p11 = por %p4621_p5, %p4620_p8 }
 0x5e2   : > { %p4623_p13 = pnand %p4622_p11, %p4616_p9 }
 0x5e4   : > { %4626 = shalt.err (!%p4623_p13)
}
 0x5e5   : > { %3758 = dma.vmem_to_hbm [thread:$0]  (%p5563_p12), %s3067_s29, 128, %s5333_s22, %s3043_s7  }
 0x5e6   : > { %s4791_s15 = smov [#allocation21]   ;;  %p5564_p1 = scmp.eq.s32.totalorder %s4890_s17, 7 }
 0x5e7   : > { %s3114_s19 = sshll.u32 %s4791_s15, 4  ;;  %s3115_s19 = int_to_ptr.vmem [resolvable:$true] %s3114_s19 }
 0x5e8   : > { %s4627_s28 = scalar_lea.vmem %s3115_s19, 128  ;;  %p4634_p10 = scmp.lt.s32.totalorder %s3115_s19, %s3115_s19 }
 0x5e9   : > { %p4628_p4 = scmp.ne.s32.totalorder %s3115_s19, %s4627_s28  ;;  %p4635_p0 = scmp.lt.s32.totalorder %s4627_s28, %s4627_s28 }
 0x5eb   : > { %p4629_p7 = pnand %p4628_p4, %p5564_p1  ;;  %p4636_p2 = por %p4635_p0, %p4634_p10 }
 0x5ed   : > { %p4630_p6 = pneg %p4629_p7 }
 0x5ef   : > { %p4637_p3 = pnand %p4636_p2, %p4630_p6 }
 0x5f1   : > { %4640 = shalt.err (!%p4637_p3)
}
 0x5f2   : > { %s5565_s26 = sld [smem:[#allocation44_spill]]  ;;  %p5566_p8 = pmov %p5564_p1 }
 0x5f8   : > { %s4641_s13 = scalar_lea.hbm %s5565_s26, 128 }
 0x5f9   : > { %p4642_p9 = scmp.ne.s32.totalorder %s5565_s26, %s4641_s13  ;;  %p4647_p13 = scmp.lt.u32.totalorder %s4641_s13, %s5565_s26 }
 0x5fb   : > { %p4643_p5 = pnand %p4642_p9, %p5566_p8 }
 0x5fd   : > { %p4644_p11 = pneg %p4643_p5 }
 0x5ff   : > { %p4649_p4 = pnand %p4647_p13, %p4644_p11 }
 0x601   : > { %4652 = shalt.err (!%p4649_p4)
}
 0x602   : > { %3764 = dma.vmem_to_hbm [thread:$0]  (%p5564_p1), %s3115_s19, 128, %s5565_s26, [#allocation20]   ;;  %v3026_v9 = vpop.xlane.xlu1 %3025  ;;  %vm3032_vm5 = vcmp.eq.s32.totalorder %v5299_v42, 2  ;;  %vm3031_vm6 = vcmp.eq.s32.totalorder %v5299_v42, 1  ;;  %vm3030_vm7 = vcmp.eq.s32.totalorder %v5299_v42, 0 }
 0x603   : > { %s3079_s0 = sshll.u32 %s622_s18, 4  ;;  %v3027_v10 = vsub.f32 0.0, %v3026_v9  ;;  %s3092_s15 = sshll.u32 %s629_s25, 4  ;;  %s5386_s0 = int_to_ptr.vmem [resolvable:$true] %s3079_s0  ;;  %s5394_s15 = int_to_ptr.vmem [resolvable:$true] %s3092_s15 }
 0x604   : > { %s5567_s24 = sld [smem:[#allocation41_spill]]  ;;  %s5568_s22 = sld [smem:[#allocation42_spill]] }
 0x605   : > { %s5400_s25 = scalar_lea.sflag [#allocation17], %s527_s20  ;;  %s4653_s7 = scalar_lea.vmem %s5386_s0, 128 }
 0x606   : > { %v3036_v13 = vpop.permute.xlu1 %3035  ;;  %p4654_p7 = scmp.ne.s32.totalorder %s5386_s0, %s4653_s7  ;;  %s4792_s23 = smov [#allocation16]  }
 0x607   : > { %v3038_v14 = vsel %vm3032_vm5, %v3036_v13, 0.0  ;;  %s4657_s21 = sshll.u32 %s4792_s23, 4  ;;  %s4658_s21 = int_to_ptr.vmem [resolvable:$false] %s4657_s21 }
 0x608   : > { %v3039_v60 = vsel %vm3031_vm6, %v3027_v10, %v3038_v14  ;;  %p4655_p6 = pnand %p4654_p7, %p5563_p12  ;;  %s4659_s19 = scalar_lea.vmem %s4658_s21, 256 }
 0x609   : > { %p4660_p0 = scmp.lt.s32.totalorder %s5386_s0, %s4658_s21  ;;  %p4661_p2 = scmp.lt.s32.totalorder %s4659_s19, %s4653_s7 }
 0x60a   : > { %s5384_s27 = scalar_lea.hbm %s5567_s24, %s5309_s12  ;;  %s5392_s29 = scalar_lea.hbm %s5568_s22, %s5309_s12 }
 0x60b   : > { %p4656_p10 = pneg %p4655_p6  ;;  %p4662_p3 = por %p4661_p2, %p4660_p0 }
 0x60d   : > { %p4663_p9 = pnand %p4662_p3, %p4656_p10 }
 0x646   : > { %v3022_v0 = vpop.xlane.xlu0 %3021 }
 0x647   : > { %v3040_v11 = vsel %vm3030_vm7, %v3022_v0, %v3039_v60 }
 0x648   : > { %3041 = vst [vmem:[%s622_s18] sm:$0xff] %v3040_v11 }
 0x649   : > { %4666 = shalt.err (!%p4663_p9)
}
 0x64a   : > { %s4667_s20 = scalar_lea.hbm %s5384_s27, 128  ;;  %s4671_s12 = scalar_lea.hbm %s5567_s24, 1024 }
 0x64b   : > { %p4668_p8 = scmp.ne.s32.totalorder %s5384_s27, %s4667_s20  ;;  %p4672_p13 = scmp.lt.u32.totalorder %s5384_s27, %s5567_s24 }
 0x64c   : > { %p4673_p4 = scmp.lt.u32.totalorder %s4671_s12, %s4667_s20  ;;  %p4675_p7 = scmp.lt.u32.totalorder %s4667_s20, %s5384_s27 }
 0x64d   : > { %p4669_p5 = pnand %p4668_p8, %p5563_p12 }
 0x64e   : > { %p4674_p1 = por %p4673_p4, %p4672_p13 }
 0x64f   : > { %p4670_p11 = pneg %p4669_p5 }
 0x650   : > { %p4676_p6 = por %p4675_p7, %p4674_p1 }
 0x652   : > { %p4677_p10 = pnand %p4676_p6, %p4670_p11 }
 0x654   : > { %4680 = shalt.err (!%p4677_p10)
}
 0x655   : > { %3759 = dma.vmem_to_hbm [thread:$0]  (%p5563_p12), %s5386_s0, 128, %s5384_s27, %s5400_s25  }
 0x656   : > { %s4681_s10 = scalar_lea.vmem %s5394_s15, 128  ;;  %s4793_s7 = smov [#allocation18]  }
 0x657   : > { %p4682_p0 = scmp.ne.s32.totalorder %s5394_s15, %s4681_s10  ;;  %s4685_s23 = sshll.u32 %s4793_s7, 4  ;;  %s4686_s23 = int_to_ptr.vmem [resolvable:$false] %s4685_s23 }
 0x658   : > { %s4687_s21 = scalar_lea.vmem %s4686_s23, 256  ;;  %p4688_p9 = scmp.lt.s32.totalorder %s5394_s15, %s4686_s23 }
 0x659   : > { %p4683_p2 = pnand %p4682_p0, %p5563_p12  ;;  %p4689_p8 = scmp.lt.s32.totalorder %s4687_s21, %s4681_s10 }
 0x65b   : > { %p4684_p3 = pneg %p4683_p2  ;;  %p4690_p5 = por %p4689_p8, %p4688_p9 }
 0x65d   : > { %p4691_p11 = pnand %p4690_p5, %p4684_p3 }
 0x65f   : > { %4694 = shalt.err (!%p4691_p11)
}
 0x660   : > { %s4695_s0 = scalar_lea.hbm %s5392_s29, 128  ;;  %s4699_s20 = scalar_lea.hbm %s5568_s22, 1024 }
 0x661   : > { %p4696_p13 = scmp.ne.s32.totalorder %s5392_s29, %s4695_s0  ;;  %p4700_p7 = scmp.lt.u32.totalorder %s5392_s29, %s5568_s22 }
 0x662   : > { %p4701_p6 = scmp.lt.u32.totalorder %s4699_s20, %s4695_s0  ;;  %p4703_p0 = scmp.lt.u32.totalorder %s4695_s0, %s5392_s29 }
 0x663   : > { %p4697_p4 = pnand %p4696_p13, %p5563_p12 }
 0x664   : > { %p4702_p10 = por %p4701_p6, %p4700_p7 }
 0x665   : > { %p4698_p1 = pneg %p4697_p4 }
 0x666   : > { %p4704_p2 = por %p4703_p0, %p4702_p10 }
 0x668   : > { %p4705_p3 = pnand %p4704_p2, %p4698_p1 }
 0x66a   : > { %4708 = shalt.err (!%p4705_p3)
}
 0x66b   : > { %3760 = dma.vmem_to_hbm [thread:$0]  (%p5563_p12), %s5394_s15, 128, %s5392_s29, %s5400_s25  }
 0x66c   : > { %p5569_p9 = scmp.eq.s32.totalorder %s4890_s17, 7 }
 0x66e   : > { %4746 = dma.done.wait (%p5569_p9), [#allocation20], 256   ;;  %p5570_p8 = pmov %p5569_p9 }
 0x670   : > { %4748 = vsyncadd (%p5570_p8), [#allocation20], 4294967040 }
 0x671 PF: > { %s5571_s12 = sld [smem:[#allocation30_spill]]  ;;  %s5572_s28 = sld [smem:[#allocation35_spill]] }
 0x672   : > { %p3823_p5 = scmp.ge.s32.totalorder %s4771_s16, 2 }
 0x677   : > { %s3134_s13 = sand.u32 1, %s5571_s12   ;;  %p5573_p11 = scmp.ne.s32.totalorder %s5572_s28, 0 }
 0x678   : > { %s3135_s10 = scalar_lea.sflag [#allocation4], %s3134_s13 }
 0x679   : > { %p3799_p13 = pnand %p3823_p5, %p5573_p11 }
 0x67b   : > { %4750 = dma.done.wait (!%p3799_p13), %s3135_s10, 128  }
 0x67c   : > { %4752 = vsyncadd (!%p3799_p13), %s3135_s10, 4294967168  ;;  %s5574_s14 = sadd.s32 4294967294, %s4771_s16  }
 0x67d   : > { %s3143_s7 = sand.u32 1, %s5574_s14  }
 0x67e   : > { %s3144_s15 = scalar_lea.sflag [#allocation17], %s3143_s7 }
 0x67f   : > { %4754 = dma.done.wait (!%p3799_p13), %s3144_s15, 256  }
 0x680   : > { %4756 = vsyncadd (!%p3799_p13), %s3144_s15, 4294967040  ;;  %s5575_s16 = sld [smem:[#allocation32_spill]]  ;;  %s5576_s17 = sld [smem:[#allocation31_spill]] }
 0x681   : > { %s5577_s15 = sld [smem:[#allocation33_spill]]  ;;  %s5578_s29 = smov %s4763_s30 }
 0x686   : > { %p35_p12 = scmp.ge.s32.totalorder %s5575_s16, 10   ;;  %s5579_s30 = smov %s5576_s17 }
 0x688   :  { %37 = sbr.rel (!%p35_p12) target bundleno = 21 (0x15), region = 199 }
 0x68f   :  { %3158 = vsyncpa [#allocation3], 1 }
 0x690   :  { %3160 = vsyncpa [#allocation3 + $0x1], 1 }
 0x691   :  { %3161 = vsyncpa [#allocation6], 1 }
 0x692   :  { %3162 = vsyncpa [#allocation9], 1 }
 0x693   :  { %3163 = vsyncpa [#allocation12], 1 }
 0x694   :  { %3164 = vsyncpa [#allocation4], 1 }
 0x695   :  { %3166 = vsyncpa [#allocation4 + $0x1], 1 }
 0x696   :  { %3167 = vsyncpa [#allocation17], 1 }
 0x697   :  { %3169 = vsyncpa [#allocation17 + $0x1], 1 }
 0x698   :  { %3170 = vsyncpa [#allocation20], 1 }

</bundles_post_ra>
